<compile_context>
chip_gen: v7x
topology: tpu7x:2x2x1
jax: 0.10.0
libtpu: 0.0.40
codegen_flags: <defaults>
</compile_context>

<pallas_src>
import math

import jax
import jax.numpy as jnp
from jax.experimental import pallas as pl
from jax.experimental.pallas import tpu as pltpu


# ----------------------------------------------------------------------------
# Kernel 1: GCN aggregation as a single lane-dense matmul.
#   y[t, v*Cout + o] = sum_{w,c} x[t, w*Cin + c] * M[w*Cin + c, v*Cout + o] + b
# where M folds all num_subset adjacency matrices and 1x1 convs (wrapper-side).
# grid = (N,), "parallel".
# ----------------------------------------------------------------------------
def _gcn_kernel(x_ref, m_ref, b_ref, y_ref):
    y_ref[...] = (jnp.dot(x_ref[...], m_ref[...],
                          preferred_element_type=jnp.float32) + b_ref[...])


def gcn_matmul(x2, M, b_tile):
    N, T, VCin = x2.shape
    VCout = M.shape[1]
    return pl.pallas_call(
        _gcn_kernel,
        out_shape=jax.ShapeDtypeStruct((N, T, VCout), jnp.float32),
        grid=(N,),
        in_specs=[
            pl.BlockSpec((None, T, VCin), lambda n: (n, 0, 0)),
            pl.BlockSpec((VCin, VCout), lambda n: (0, 0)),     # weight: resident
            pl.BlockSpec((1, VCout), lambda n: (0, 0)),
        ],
        out_specs=pl.BlockSpec((None, T, VCout), lambda n: (n, 0, 0)),
        compiler_params=pltpu.CompilerParams(dimension_semantics=("parallel",)),
    )(x2, M, b_tile)


# ----------------------------------------------------------------------------
# Kernel 2: fused CBAM (channel + spatial attention) + main BN + down path +
# ReLU + unit_tcn (9x1 conv + BN) + residual branch + final ReLU.
# grid = (N,), "parallel".  All intermediates live in VMEM.
# ----------------------------------------------------------------------------
def _cbam_bn_tcn_kernel(y_ref, x_ref, w1t_ref, w2t_ref, ka_ref, km_ref,
                        bns_ref, bnb_ref, wd_ref, bd_ref, w9_ref, b9_ref,
                        wr_ref, br_ref, spb_ref, out_ref):
    T, V, Cout = y_ref.shape
    Cin = x_ref.shape[-1]
    TV = T * V

    y3 = y_ref[...]                                        # (T, V, Cout)
    y2 = y3.reshape(TV, Cout)

    # ---- CBAM channel attention (both "pools" are adaptive avg in the module) ----
    avg = jnp.mean(y2, axis=0, keepdims=True)              # (1, Cout)
    h = jnp.maximum(
        jnp.dot(avg, w1t_ref[...], preferred_element_type=jnp.float32), 0.0)
    att = jax.nn.sigmoid(
        2.0 * jnp.dot(h, w2t_ref[...], preferred_element_type=jnp.float32))
    o1 = y3 * att[None]                                    # (T, V, Cout)

    # ---- CBAM spatial attention: 7x7 conv via Toeplitz-bank matmul ----
    mm = jnp.mean(o1, axis=2)                              # (T, V) channel mean
    mx = jnp.max(o1, axis=2)                               # (T, V) channel max
    zrow = jnp.zeros((3, V), jnp.float32)                  # temporal zero pad
    mmp = jnp.concatenate([zrow, mm, zrow], axis=0)        # (T+6, V)
    mxp = jnp.concatenate([zrow, mx, zrow], axis=0)
    q = (jnp.dot(mmp, ka_ref[...], preferred_element_type=jnp.float32)
         + jnp.dot(mxp, km_ref[...], preferred_element_type=jnp.float32))  # (T+6, 7V)
    acc = jnp.zeros((T, V), jnp.float32) + spb_ref[0]
    for kh in range(7):                                    # 7 static slices (was 98)
        acc = acc + jax.lax.slice(q, (kh, kh * V), (kh + T, (kh + 1) * V))
    sa = jax.nn.sigmoid(acc)                               # (T, V)
    o2 = (o1 * sa[:, :, None]).reshape(TV, Cout)

    # ---- main BN (folded) + unit_gcn down path + ReLU ----
    x2 = x_ref[...].reshape(TV, Cin)
    d = jnp.dot(x2, wd_ref[...], preferred_element_type=jnp.float32) + bd_ref[...]
    g = jnp.maximum(o2 * bns_ref[...] + bnb_ref[...] + d, 0.0)   # (TV, Cout)

    # ---- unit_tcn: 9x1 temporal conv (pad 4) + BN (folded into w9/b9) ----
    w9 = w9_ref[...]                                       # (9*Cout, Cout)
    zpad = jnp.zeros((4 * V, Cout), jnp.float32)
    gp = jnp.concatenate([zpad, g, zpad], axis=0)          # ((T+8)*V, Cout)
    t_acc = jnp.zeros((TV, Cout), jnp.float32) + b9_ref[...]
    for dt in range(9):
        t_acc = t_acc + jnp.dot(gp[dt * V:dt * V + TV, :],
                                w9[dt * Cout:(dt + 1) * Cout, :],
                                preferred_element_type=jnp.float32)

    # ---- TCN_GCN_unit residual (1x1 conv + BN folded, or identity) + ReLU ----
    r = jnp.dot(x2, wr_ref[...], preferred_element_type=jnp.float32) + br_ref[...]
    out_ref[...] = jnp.maximum(t_acc + r, 0.0)


def cbam_bn_tcn(y_l, x_l, w1t, w2t, ka, km, bns, bnb, wd, bd, w9p, b9, wr, br, sp_b):
    N, T, V, Cout = y_l.shape
    Cin = x_l.shape[-1]
    Ch = w1t.shape[-1]
    return pl.pallas_call(
        _cbam_bn_tcn_kernel,
        out_shape=jax.ShapeDtypeStruct((N, T * V, Cout), jnp.float32),
        grid=(N,),
        in_specs=[
            pl.BlockSpec((None, T, V, Cout), lambda n: (n, 0, 0, 0)),
            pl.BlockSpec((None, T, V, Cin), lambda n: (n, 0, 0, 0)),
            pl.BlockSpec((Cout, Ch), lambda n: (0, 0)),
            pl.BlockSpec((Ch, Cout), lambda n: (0, 0)),
            pl.BlockSpec((V, 7 * V), lambda n: (0, 0)),
            pl.BlockSpec((V, 7 * V), lambda n: (0, 0)),
            pl.BlockSpec((1, Cout), lambda n: (0, 0)),
            pl.BlockSpec((1, Cout), lambda n: (0, 0)),
            pl.BlockSpec((Cin, Cout), lambda n: (0, 0)),
            pl.BlockSpec((1, Cout), lambda n: (0, 0)),
            pl.BlockSpec((9 * Cout, Cout), lambda n: (0, 0)),
            pl.BlockSpec((1, Cout), lambda n: (0, 0)),
            pl.BlockSpec((Cin, Cout), lambda n: (0, 0)),
            pl.BlockSpec((1, Cout), lambda n: (0, 0)),
            pl.BlockSpec(memory_space=pltpu.MemorySpace.SMEM),
        ],
        out_specs=pl.BlockSpec((None, T * V, Cout), lambda n: (n, 0, 0)),
        compiler_params=pltpu.CompilerParams(dimension_semantics=("parallel",)),
    )(y_l, x_l, w1t, w2t, ka, km, bns, bnb, wd, bd, w9p, b9, wr, br, sp_b)


# ----------------------------------------------------------------------------
# Wrapper-side parameter folding helpers (weight folding only, no activations).
# ----------------------------------------------------------------------------
def _toeplitz_bank(w7, V):
    # w7: (7, 7) kernel slice for one input map.  Returns (V, 7V) bank K with
    # (padded_map @ K)[t', kh*V + v] = sum_kw w7[kh, kw] * padded_map[t', v+kw-3]
    u = jnp.arange(V)[:, None]
    v = jnp.arange(V)[None, :]
    idx = u - v + 3
    valid = (idx >= 0) & (idx <= 6)
    blocks = []
    for kh in range(7):
        blocks.append(jnp.where(valid, w7[kh][jnp.clip(idx, 0, 6)], 0.0))
    return jnp.concatenate(blocks, axis=1).astype(jnp.float32)


# ----------------------------------------------------------------------------
# Full forward (glue in plain JAX, hot paths in Pallas)
# ----------------------------------------------------------------------------
def tcn_gcn_forward(x, p):
    N, Cin, T, V = x.shape
    Cout = p['conv_w'].shape[1]
    eps = 1e-5
    hi = jax.lax.Precision.HIGHEST

    x_l = jnp.transpose(x, (0, 2, 3, 1)).astype(jnp.float32)      # (N, T, V, Cin)
    x2 = x_l.reshape(N, T, V * Cin)

    # --- fold (A_i + PA_i) and the per-subset 1x1 convs into one matrix ---
    Aeff = p['A'] + p['PA']                                       # (S, V, V)
    M = jnp.einsum('iwv,ioc->wcvo', Aeff, p['conv_w'],
                   precision=hi).reshape(V * Cin, V * Cout)
    b_tile = jnp.tile(jnp.sum(p['conv_b'], axis=0), (V,)).reshape(1, V * Cout)

    y2 = gcn_matmul(x2, M, b_tile)                                # (N, T, V*Cout)
    y_l = y2.reshape(N, T, V, Cout)                               # free reshape

    # --- CBAM MLP (transposed for right-multiplication) ---
    w1t = p['mlp_w1'].T                                           # (Cout, Ch)
    w2t = p['mlp_w2'].T                                           # (Ch, Cout)

    # --- spatial 7x7 conv -> Toeplitz banks ---
    ka = _toeplitz_bank(p['sp_w'][0], V)
    km = _toeplitz_bank(p['sp_w'][1], V)

    # --- fold BNs (inference mode) ---
    s_bn = p['bn_gamma'] / jnp.sqrt(p['bn_var'] + eps)
    bns = s_bn.reshape(1, Cout)
    bnb = (p['bn_beta'] - p['bn_mean'] * s_bn).reshape(1, Cout)

    if Cin == Cout:                                               # down = identity
        wd = jnp.eye(Cin, dtype=jnp.float32)
        bd = jnp.zeros((1, Cout), jnp.float32)
    else:
        s_d = p['dbn_gamma'] / jnp.sqrt(p['dbn_var'] + eps)
        wd = p['down_w'].T * s_d[None, :]
        bd = ((p['down_b'] - p['dbn_mean']) * s_d + p['dbn_beta']).reshape(1, Cout)

    s_t = p['tbn_gamma'] / jnp.sqrt(p['tbn_var'] + eps)
    w9p = (jnp.transpose(p['t_w'][:, :, :, 0], (2, 1, 0))         # (9, Cout_in, Cout_out)
           * s_t[None, None, :]).reshape(9 * Cout, Cout)
    b9 = ((p['t_b'] - p['tbn_mean']) * s_t + p['tbn_beta']).reshape(1, Cout)

    if Cin == Cout:                                               # residual = identity
        wr = jnp.eye(Cin, dtype=jnp.float32)
        br = jnp.zeros((1, Cout), jnp.float32)
    else:
        s_r = p['rbn_gamma'] / jnp.sqrt(p['rbn_var'] + eps)
        wr = p['r_w'][:, :, 0, 0].T * s_r[None, :]
        br = ((p['r_b'] - p['rbn_mean']) * s_r + p['rbn_beta']).reshape(1, Cout)

    out2 = cbam_bn_tcn(y_l, x_l, w1t, w2t, ka, km, bns, bnb, wd, bd,
                       w9p, b9, wr, br, p['sp_b'])
    return jnp.transpose(out2.reshape(N, T, V, Cout), (0, 3, 1, 2))  # (N, Cout, T, V)


# ----------------------------------------------------------------------------
# Pure-JAX reference (mirrors the PyTorch TCN_GCN_unit forward, NCHW layout)
# ----------------------------------------------------------------------------
def tcn_gcn_reference(x, p):
    N, Cin, T, V = x.shape
    Cout = p['conv_w'].shape[1]
    eps = 1e-5
    hi = jax.lax.Precision.HIGHEST

    def bn(z, g, b, m, v):
        s = g / jnp.sqrt(v + eps)
        return s[None, :, None, None] * (z - m[None, :, None, None]) \
            + b[None, :, None, None]

    # ---------------- unit_gcn ----------------
    A = p['A'] + p['PA']
    y = 0.0
    for i in range(A.shape[0]):
        xa = jnp.matmul(x.reshape(-1, V), A[i], precision=hi).reshape(N, Cin, T, V)
        y = y + jnp.einsum('oc,nctv->notv', p['conv_w'][i], xa, precision=hi) \
            + p['conv_b'][i][None, :, None, None]

    avg = jnp.mean(y, axis=(2, 3))                                 # (N, Cout)

    def mlp(z):
        h = jnp.maximum(jnp.dot(z, p['mlp_w1'].T, precision=hi), 0.0)
        return jnp.dot(h, p['mlp_w2'].T, precision=hi)

    ca = jax.nn.sigmoid(mlp(avg) + mlp(avg))[:, :, None, None]     # max_pool == avg_pool
    o1 = ca * y

    avgm = jnp.mean(o1, axis=1, keepdims=True)
    maxm = jnp.max(o1, axis=1, keepdims=True)
    cat = jnp.concatenate([avgm, maxm], axis=1)
    sconv = jax.lax.conv_general_dilated(
        cat, p['sp_w'][None], (1, 1), ((3, 3), (3, 3)),
        dimension_numbers=('NCHW', 'OIHW', 'NCHW'), precision=hi) + p['sp_b'][0]
    o2 = jax.nn.sigmoid(sconv) * o1

    yb = bn(o2, p['bn_gamma'], p['bn_beta'], p['bn_mean'], p['bn_var'])
    if Cin == Cout:
        down = x
    else:
        dc = jnp.einsum('oc,nctv->notv', p['down_w'], x, precision=hi) \
            + p['down_b'][None, :, None, None]
        down = bn(dc, p['dbn_gamma'], p['dbn_beta'], p['dbn_mean'], p['dbn_var'])
    g = jnp.maximum(yb + down, 0.0)

    # ---------------- unit_tcn (9x1, stride 1) ----------------
    t = jax.lax.conv_general_dilated(
        g, p['t_w'], (1, 1), ((4, 4), (0, 0)),
        dimension_numbers=('NCHW', 'OIHW', 'NCHW'), precision=hi) \
        + p['t_b'][None, :, None, None]
    t = bn(t, p['tbn_gamma'], p['tbn_beta'], p['tbn_mean'], p['tbn_var'])

    # ---------------- residual (unit_tcn kernel 1) ----------------
    if Cin == Cout:
        r = x
    else:
        r = jax.lax.conv_general_dilated(
            x, p['r_w'], (1, 1), ((0, 0), (0, 0)),
            dimension_numbers=('NCHW', 'OIHW', 'NCHW'), precision=hi) \
            + p['r_b'][None, :, None, None]
        r = bn(r, p['rbn_gamma'], p['rbn_beta'], p['rbn_mean'], p['rbn_var'])

    return jnp.maximum(t + r, 0.0)


if __name__ == "__main__":
    N, Cin, Cout, T, V, S = 2, 16, 32, 8, 16, 5
    ratio = 16
    Ch = Cout // ratio

    key = jax.random.PRNGKey(0)
    k = jax.random.split(key, 32)

    def u(i, shape, lo, hi_):
        return jax.random.uniform(k[i], shape, jnp.float32, lo, hi_)

    def nrm(i, shape, scale):
        return jax.random.normal(k[i], shape, jnp.float32) * scale

    # BN running stats / affine params are randomized (as if after training) so the
    # CBAM + BN + TCN folding is actually exercised numerically.
    params = dict(
        A=u(0, (S, V, V), 0.0, 0.1),
        PA=jnp.full((S, V, V), 1e-6, jnp.float32),
        conv_w=nrm(1, (S, Cout, Cin), math.sqrt(2.0 / Cout)),     # kaiming fan_out
        conv_b=nrm(2, (S, Cout), 0.1),
        mlp_w1=nrm(3, (Ch, Cout), 1.0 / math.sqrt(Cout)),
        mlp_w2=nrm(4, (Cout, Ch), 1.0 / math.sqrt(Ch)),
        sp_w=nrm(5, (2, 7, 7), 1.0 / math.sqrt(2 * 49)),
        sp_b=nrm(6, (1,), 0.1),
        bn_gamma=u(7, (Cout,), 0.5, 1.5),
        bn_beta=nrm(8, (Cout,), 0.1),
        bn_mean=nrm(9, (Cout,), 0.1),
        bn_var=u(10, (Cout,), 0.5, 1.5),
        down_w=nrm(11, (Cout, Cin), 1.0 / math.sqrt(Cin)),
        down_b=nrm(12, (Cout,), 0.1),
        dbn_gamma=u(13, (Cout,), 0.5, 1.5),
        dbn_beta=nrm(14, (Cout,), 0.1),
        dbn_mean=nrm(15, (Cout,), 0.1),
        dbn_var=u(16, (Cout,), 0.5, 1.5),
        t_w=nrm(17, (Cout, Cout, 9, 1), math.sqrt(2.0 / (Cout * 9))),
        t_b=nrm(18, (Cout,), 0.1),
        tbn_gamma=u(19, (Cout,), 0.5, 1.5),
        tbn_beta=nrm(20, (Cout,), 0.1),
        tbn_mean=nrm(21, (Cout,), 0.1),
        tbn_var=u(22, (Cout,), 0.5, 1.5),
        r_w=nrm(23, (Cout, Cin, 1, 1), math.sqrt(2.0 / Cout)),
        r_b=nrm(24, (Cout,), 0.1),
        rbn_gamma=u(25, (Cout,), 0.5, 1.5),
        rbn_beta=nrm(26, (Cout,), 0.1),
        rbn_mean=nrm(27, (Cout,), 0.1),
        rbn_var=u(28, (Cout,), 0.5, 1.5),
    )

    x = jax.random.normal(k[29], (N, Cin, T, V), jnp.float32)

    fwd = jax.jit(tcn_gcn_forward)
    out = jax.block_until_ready(fwd(x, params))
    assert out.shape == (N, Cout, T, V), out.shape

    ref = tcn_gcn_reference(x, params)
    if not bool(jnp.allclose(out, ref, rtol=1e-3, atol=5e-4)):
        raise AssertionError(
            f"Pallas/ref mismatch, max abs err = {float(jnp.max(jnp.abs(out - ref)))}")
    print("KERNEL_OK")
</pallas_src>

<mosaic_0001>
module attributes {stable_mosaic.version = 11 : i64} {
  func.func @_gcn_kernel(%arg0: i32, %arg1: memref<1x8x256xf32, #tpu.memory_space<vmem>>, %arg2: memref<256x512xf32, #tpu.memory_space<vmem>>, %arg3: memref<1x512xf32, #tpu.memory_space<vmem>>, %arg4: memref<1x8x512xf32, #tpu.memory_space<vmem>>) attributes {dimension_semantics = [#tpu.dimension_semantics<parallel>], iteration_bounds = array<i64: 2>, scalar_prefetch = 0 : i64, scratch_operands = 0 : i64, tpu.core_type = #tpu.core_type<tc>, window_params = [{transform_indices = @transform_0, window_bounds = array<i64: 1, 8, 256>}, {pipeline_mode = #tpu.pipeline_mode<synchronous>, transform_indices = @transform_1, window_bounds = array<i64: 256, 512>}, {pipeline_mode = #tpu.pipeline_mode<synchronous>, transform_indices = @transform_2, window_bounds = array<i64: 1, 512>}, {transform_indices = @transform_3, window_bounds = array<i64: 1, 8, 512>}]} {
    %c0 = arith.constant 0 : index
    %c0_0 = arith.constant 0 : index
    %c0_1 = arith.constant 0 : index
    %0 = vector.load %arg1[%c0, %c0_0, %c0_1] : memref<1x8x256xf32, #tpu.memory_space<vmem>>, vector<1x8x256xf32>
    %1 = vector.shape_cast %0 : vector<1x8x256xf32> to vector<8x256xf32>
    %c0_2 = arith.constant 0 : index
    %c0_3 = arith.constant 0 : index
    %2 = vector.load %arg2[%c0_2, %c0_3] : memref<256x512xf32, #tpu.memory_space<vmem>>, vector<256x512xf32>
    %cst = arith.constant dense<0.000000e+00> : vector<8x512xf32>
    %3 = tpu.matmul %1, %2, %cst {dimension_numbers = #tpu.dot_dimension_numbers<[1], [0], [0], [1], [0, 0, 1, 1], [], []>} : vector<8x256xf32>, vector<256x512xf32>, vector<8x512xf32> -> vector<8x512xf32>
    %c0_4 = arith.constant 0 : index
    %c0_5 = arith.constant 0 : index
    %4 = vector.load %arg3[%c0_4, %c0_5] : memref<1x512xf32, #tpu.memory_space<vmem>>, vector<1x512xf32>
    %5 = vector.broadcast %4 : vector<1x512xf32> to vector<8x512xf32>
    %6 = arith.addf %3, %5 : vector<8x512xf32>
    %c0_6 = arith.constant 0 : index
    %c0_7 = arith.constant 0 : index
    %c0_8 = arith.constant 0 : index
    %7 = vector.load %arg4[%c0_6, %c0_7, %c0_8] : memref<1x8x512xf32, #tpu.memory_space<vmem>>, vector<1x8x512xf32>
    %8 = vector.shape_cast %7 : vector<1x8x512xf32> to vector<8x512xf32>
    %9 = vector.shape_cast %6 : vector<8x512xf32> to vector<1x8x512xf32>
    tpu.vector_store %arg4[%c0_6, %c0_7, %c0_8], %9 {strides = array<i32>} : memref<1x8x512xf32, #tpu.memory_space<vmem>>, vector<1x8x512xf32>,
    return
  }
  func.func @transform_0(%arg0: i32) -> (i32, i32, i32) {
    %c0_i32 = arith.constant 0 : i32
    %c0_i32_0 = arith.constant 0 : i32
    %c0_i32_1 = arith.constant 0 : i32
    return %arg0, %c0_i32, %c0_i32_0 : i32, i32, i32
  }
  func.func @transform_1(%arg0: i32) -> (i32, i32) {
    %c0_i32 = arith.constant 0 : i32
    %c0_i32_0 = arith.constant 0 : i32
    %c0_i32_1 = arith.constant 0 : i32
    return %c0_i32, %c0_i32_0 : i32, i32
  }
  func.func @transform_2(%arg0: i32) -> (i32, i32) {
    %c0_i32 = arith.constant 0 : i32
    %c0_i32_0 = arith.constant 0 : i32
    %c0_i32_1 = arith.constant 0 : i32
    return %c0_i32, %c0_i32_0 : i32, i32
  }
  func.func @transform_3(%arg0: i32) -> (i32, i32, i32) {
    %c0_i32 = arith.constant 0 : i32
    %c0_i32_0 = arith.constant 0 : i32
    %c0_i32_1 = arith.constant 0 : i32
    return %arg0, %c0_i32, %c0_i32_0 : i32, i32, i32
  }
}

module attributes {stable_mosaic.version = 11 : i64} {
  func.func @_cbam_bn_tcn_kernel(%arg0: i32, %arg1: memref<1x8x16x32xf32, #tpu.memory_space<vmem>>, %arg2: memref<1x8x16x16xf32, #tpu.memory_space<vmem>>, %arg3: memref<32x2xf32, #tpu.memory_space<vmem>>, %arg4: memref<2x32xf32, #tpu.memory_space<vmem>>, %arg5: memref<16x112xf32, #tpu.memory_space<vmem>>, %arg6: memref<16x112xf32, #tpu.memory_space<vmem>>, %arg7: memref<1x32xf32, #tpu.memory_space<vmem>>, %arg8: memref<1x32xf32, #tpu.memory_space<vmem>>, %arg9: memref<16x32xf32, #tpu.memory_space<vmem>>, %arg10: memref<1x32xf32, #tpu.memory_space<vmem>>, %arg11: memref<288x32xf32, #tpu.memory_space<vmem>>, %arg12: memref<1x32xf32, #tpu.memory_space<vmem>>, %arg13: memref<16x32xf32, #tpu.memory_space<vmem>>, %arg14: memref<1x32xf32, #tpu.memory_space<vmem>>, %arg15: memref<1xf32, #tpu.memory_space<smem>>, %arg16: memref<1x128x32xf32, #tpu.memory_space<vmem>>) attributes {dimension_semantics = [#tpu.dimension_semantics<parallel>], iteration_bounds = array<i64: 2>, scalar_prefetch = 0 : i64, scratch_operands = 0 : i64, tpu.core_type = #tpu.core_type<tc>, window_params = [{transform_indices = @transform_0, window_bounds = array<i64: 1, 8, 16, 32>}, {transform_indices = @transform_1, window_bounds = array<i64: 1, 8, 16, 16>}, {pipeline_mode = #tpu.pipeline_mode<synchronous>, transform_indices = @transform_2, window_bounds = array<i64: 32, 2>}, {pipeline_mode = #tpu.pipeline_mode<synchronous>, transform_indices = @transform_3, window_bounds = array<i64: 2, 32>}, {pipeline_mode = #tpu.pipeline_mode<synchronous>, transform_indices = @transform_4, window_bounds = array<i64: 16, 112>}, {pipeline_mode = #tpu.pipeline_mode<synchronous>, transform_indices = @transform_5, window_bounds = array<i64: 16, 112>}, {pipeline_mode = #tpu.pipeline_mode<synchronous>, transform_indices = @transform_6, window_bounds = array<i64: 1, 32>}, {pipeline_mode = #tpu.pipeline_mode<synchronous>, transform_indices = @transform_7, window_bounds = array<i64: 1, 32>}, {pipeline_mode = #tpu.pipeline_mode<synchronous>, transform_indices = @transform_8, window_bounds = array<i64: 16, 32>}, {pipeline_mode = #tpu.pipeline_mode<synchronous>, transform_indices = @transform_9, window_bounds = array<i64: 1, 32>}, {pipeline_mode = #tpu.pipeline_mode<synchronous>, transform_indices = @transform_10, window_bounds = array<i64: 288, 32>}, {pipeline_mode = #tpu.pipeline_mode<synchronous>, transform_indices = @transform_11, window_bounds = array<i64: 1, 32>}, {pipeline_mode = #tpu.pipeline_mode<synchronous>, transform_indices = @transform_12, window_bounds = array<i64: 16, 32>}, {pipeline_mode = #tpu.pipeline_mode<synchronous>, transform_indices = @transform_13, window_bounds = array<i64: 1, 32>}, {transform_indices = @transform_14, window_bounds = array<i64: 1>}, {transform_indices = @transform_15, window_bounds = array<i64: 1, 128, 32>}]} {
    %c0 = arith.constant 0 : index
    %c0_0 = arith.constant 0 : index
    %c0_1 = arith.constant 0 : index
    %c0_2 = arith.constant 0 : index
    %0 = vector.load %arg1[%c0, %c0_0, %c0_1, %c0_2] : memref<1x8x16x32xf32, #tpu.memory_space<vmem>>, vector<1x8x16x32xf32>
    %1 = vector.shape_cast %0 : vector<1x8x16x32xf32> to vector<8x16x32xf32>
    %2 = vector.shape_cast %1 : vector<8x16x32xf32> to vector<128x32xf32>
    %cst = arith.constant dense<0.000000e+00> : vector<32xf32>
    %3 = vector.multi_reduction <add>, %2, %cst [0] : vector<128x32xf32> to vector<32xf32>
    %4 = vector.shape_cast %3 : vector<32xf32> to vector<1x32xf32>
    %cst_3 = arith.constant 1.280000e+02 : f32
    %5 = vector.broadcast %cst_3 : f32 to vector<1x32xf32>
    %6 = arith.divf %4, %5 : vector<1x32xf32>
    %c0_4 = arith.constant 0 : index
    %c0_5 = arith.constant 0 : index
    %7 = vector.load %arg3[%c0_4, %c0_5] : memref<32x2xf32, #tpu.memory_space<vmem>>, vector<32x2xf32>
    %cst_6 = arith.constant dense<0.000000e+00> : vector<1x2xf32>
    %8 = tpu.matmul %6, %7, %cst_6 {dimension_numbers = #tpu.dot_dimension_numbers<[1], [0], [0], [1], [0, 0, 1, 1], [], []>} : vector<1x32xf32>, vector<32x2xf32>, vector<1x2xf32> -> vector<1x2xf32>
    %cst_7 = arith.constant 0.000000e+00 : f32
    %9 = vector.broadcast %cst_7 : f32 to vector<1x2xf32>
    %10 = arith.maximumf %8, %9 : vector<1x2xf32>
    %c0_8 = arith.constant 0 : index
    %c0_9 = arith.constant 0 : index
    %11 = vector.load %arg4[%c0_8, %c0_9] : memref<2x32xf32, #tpu.memory_space<vmem>>, vector<2x32xf32>
    %cst_10 = arith.constant dense<0.000000e+00> : vector<1x32xf32>
    %12 = tpu.matmul %10, %11, %cst_10 {dimension_numbers = #tpu.dot_dimension_numbers<[1], [0], [0], [1], [0, 0, 1, 1], [], []>} : vector<1x2xf32>, vector<2x32xf32>, vector<1x32xf32> -> vector<1x32xf32>
    %cst_11 = arith.constant 2.000000e+00 : f32
    %13 = vector.broadcast %cst_11 : f32 to vector<1x32xf32>
    %14 = arith.mulf %13, %12 : vector<1x32xf32>
    %15 = arith.negf %14 : vector<1x32xf32>
    %16 = math.exp %15 : vector<1x32xf32>
    %cst_12 = arith.constant 1.000000e+00 : f32
    %17 = vector.broadcast %cst_12 : f32 to vector<1x32xf32>
    %18 = arith.addf %17, %16 : vector<1x32xf32>
    %19 = arith.divf %17, %18 : vector<1x32xf32>
    %20 = vector.shape_cast %19 : vector<1x32xf32> to vector<1x1x32xf32>
    %21 = vector.broadcast %20 : vector<1x1x32xf32> to vector<8x16x32xf32>
    %22 = arith.mulf %1, %21 : vector<8x16x32xf32>
    %cst_13 = arith.constant dense<0.000000e+00> : vector<8x16xf32>
    %23 = vector.multi_reduction <add>, %22, %cst_13 [2] : vector<8x16x32xf32> to vector<8x16xf32>
    %cst_14 = arith.constant 3.200000e+01 : f32
    %24 = vector.broadcast %cst_14 : f32 to vector<8x16xf32>
    %25 = arith.divf %23, %24 : vector<8x16xf32>
    %cst_15 = arith.constant dense<0xFF800000> : vector<8x16xf32>
    %26 = vector.multi_reduction <maximumf>, %22, %cst_15 [2] : vector<8x16x32xf32> to vector<8x16xf32>
    %cst_16 = arith.constant 0.000000e+00 : f32
    %27 = vector.broadcast %cst_16 : f32 to vector<3x16xf32>
    %28 = tpu.concatenate %27, %25, %27 in 0 : vector<3x16xf32>, vector<8x16xf32>, vector<3x16xf32> -> vector<14x16xf32>
    %29 = tpu.concatenate %27, %26, %27 in 0 : vector<3x16xf32>, vector<8x16xf32>, vector<3x16xf32> -> vector<14x16xf32>
    %c0_17 = arith.constant 0 : index
    %c0_18 = arith.constant 0 : index
    %30 = vector.load %arg5[%c0_17, %c0_18] : memref<16x112xf32, #tpu.memory_space<vmem>>, vector<16x112xf32>
    %cst_19 = arith.constant dense<0.000000e+00> : vector<14x112xf32>
    %31 = tpu.matmul %28, %30, %cst_19 {dimension_numbers = #tpu.dot_dimension_numbers<[1], [0], [0], [1], [0, 0, 1, 1], [], []>} : vector<14x16xf32>, vector<16x112xf32>, vector<14x112xf32> -> vector<14x112xf32>
    %c0_20 = arith.constant 0 : index
    %c0_21 = arith.constant 0 : index
    %32 = vector.load %arg6[%c0_20, %c0_21] : memref<16x112xf32, #tpu.memory_space<vmem>>, vector<16x112xf32>
    %cst_22 = arith.constant dense<0.000000e+00> : vector<14x112xf32>
    %33 = tpu.matmul %29, %32, %cst_22 {dimension_numbers = #tpu.dot_dimension_numbers<[1], [0], [0], [1], [0, 0, 1, 1], [], []>} : vector<14x16xf32>, vector<16x112xf32>, vector<14x112xf32> -> vector<14x112xf32>
    %34 = arith.addf %31, %33 : vector<14x112xf32>
    %cst_23 = arith.constant 0.000000e+00 : f32
    %35 = vector.broadcast %cst_23 : f32 to vector<8x16xf32>
    %c0_24 = arith.constant 0 : index
    %36 = memref.load %arg15[%c0_24] : memref<1xf32, #tpu.memory_space<smem>>
    %37 = vector.broadcast %36 : f32 to vector<8x16xf32>
    %38 = arith.addf %35, %37 : vector<8x16xf32>
    %39 = vector.extract_strided_slice %34 {offsets = [0, 0], sizes = [8, 16], strides = [1, 1]} : vector<14x112xf32> to vector<8x16xf32>
    %40 = arith.addf %38, %39 : vector<8x16xf32>
    %41 = vector.extract_strided_slice %34 {offsets = [1, 16], sizes = [8, 16], strides = [1, 1]} : vector<14x112xf32> to vector<8x16xf32>
    %42 = arith.addf %40, %41 : vector<8x16xf32>
    %43 = vector.extract_strided_slice %34 {offsets = [2, 32], sizes = [8, 16], strides = [1, 1]} : vector<14x112xf32> to vector<8x16xf32>
    %44 = arith.addf %42, %43 : vector<8x16xf32>
    %45 = vector.extract_strided_slice %34 {offsets = [3, 48], sizes = [8, 16], strides = [1, 1]} : vector<14x112xf32> to vector<8x16xf32>
    %46 = arith.addf %44, %45 : vector<8x16xf32>
    %47 = vector.extract_strided_slice %34 {offsets = [4, 64], sizes = [8, 16], strides = [1, 1]} : vector<14x112xf32> to vector<8x16xf32>
    %48 = arith.addf %46, %47 : vector<8x16xf32>
    %49 = vector.extract_strided_slice %34 {offsets = [5, 80], sizes = [8, 16], strides = [1, 1]} : vector<14x112xf32> to vector<8x16xf32>
    %50 = arith.addf %48, %49 : vector<8x16xf32>
    %51 = vector.extract_strided_slice %34 {offsets = [6, 96], sizes = [8, 16], strides = [1, 1]} : vector<14x112xf32> to vector<8x16xf32>
    %52 = arith.addf %50, %51 : vector<8x16xf32>
    %53 = arith.negf %52 : vector<8x16xf32>
    %54 = math.exp %53 : vector<8x16xf32>
    %cst_25 = arith.constant 1.000000e+00 : f32
    %55 = vector.broadcast %cst_25 : f32 to vector<8x16xf32>
    %56 = arith.addf %55, %54 : vector<8x16xf32>
    %57 = arith.divf %55, %56 : vector<8x16xf32>
    %58 = vector.shape_cast %57 : vector<8x16xf32> to vector<8x16x1xf32>
    %59 = vector.broadcast %58 : vector<8x16x1xf32> to vector<8x16x32xf32>
    %60 = arith.mulf %22, %59 : vector<8x16x32xf32>
    %61 = vector.shape_cast %60 : vector<8x16x32xf32> to vector<128x32xf32>
    %c0_26 = arith.constant 0 : index
    %c0_27 = arith.constant 0 : index
    %c0_28 = arith.constant 0 : index
    %c0_29 = arith.constant 0 : index
    %62 = vector.load %arg2[%c0_26, %c0_27, %c0_28, %c0_29] : memref<1x8x16x16xf32, #tpu.memory_space<vmem>>, vector<1x8x16x16xf32>
    %63 = vector.shape_cast %62 : vector<1x8x16x16xf32> to vector<8x16x16xf32>
    %64 = vector.shape_cast %63 : vector<8x16x16xf32> to vector<128x16xf32>
    %c0_30 = arith.constant 0 : index
    %c0_31 = arith.constant 0 : index
    %65 = vector.load %arg9[%c0_30, %c0_31] : memref<16x32xf32, #tpu.memory_space<vmem>>, vector<16x32xf32>
    %cst_32 = arith.constant dense<0.000000e+00> : vector<128x32xf32>
    %66 = tpu.matmul %64, %65, %cst_32 {dimension_numbers = #tpu.dot_dimension_numbers<[1], [0], [0], [1], [0, 0, 1, 1], [], []>} : vector<128x16xf32>, vector<16x32xf32>, vector<128x32xf32> -> vector<128x32xf32>
    %c0_33 = arith.constant 0 : index
    %c0_34 = arith.constant 0 : index
    %67 = vector.load %arg10[%c0_33, %c0_34] : memref<1x32xf32, #tpu.memory_space<vmem>>, vector<1x32xf32>
    %68 = vector.broadcast %67 : vector<1x32xf32> to vector<128x32xf32>
    %69 = arith.addf %66, %68 : vector<128x32xf32>
    %c0_35 = arith.constant 0 : index
    %c0_36 = arith.constant 0 : index
    %70 = vector.load %arg7[%c0_35, %c0_36] : memref<1x32xf32, #tpu.memory_space<vmem>>, vector<1x32xf32>
    %71 = vector.broadcast %70 : vector<1x32xf32> to vector<128x32xf32>
    %72 = arith.mulf %61, %71 : vector<128x32xf32>
    %c0_37 = arith.constant 0 : index
    %c0_38 = arith.constant 0 : index
    %73 = vector.load %arg8[%c0_37, %c0_38] : memref<1x32xf32, #tpu.memory_space<vmem>>, vector<1x32xf32>
    %74 = vector.broadcast %73 : vector<1x32xf32> to vector<128x32xf32>
    %75 = arith.addf %72, %74 : vector<128x32xf32>
    %76 = arith.addf %75, %69 : vector<128x32xf32>
    %cst_39 = arith.constant 0.000000e+00 : f32
    %77 = vector.broadcast %cst_39 : f32 to vector<128x32xf32>
    %78 = arith.maximumf %76, %77 : vector<128x32xf32>
    %c0_40 = arith.constant 0 : index
    %c0_41 = arith.constant 0 : index
    %79 = vector.load %arg11[%c0_40, %c0_41] : memref<288x32xf32, #tpu.memory_space<vmem>>, vector<288x32xf32>
    %cst_42 = arith.constant 0.000000e+00 : f32
    %80 = vector.broadcast %cst_42 : f32 to vector<64x32xf32>
    %81 = tpu.concatenate %80, %78, %80 in 0 : vector<64x32xf32>, vector<128x32xf32>, vector<64x32xf32> -> vector<256x32xf32>
    %cst_43 = arith.constant 0.000000e+00 : f32
    %82 = vector.broadcast %cst_43 : f32 to vector<128x32xf32>
    %c0_44 = arith.constant 0 : index
    %c0_45 = arith.constant 0 : index
    %83 = vector.load %arg12[%c0_44, %c0_45] : memref<1x32xf32, #tpu.memory_space<vmem>>, vector<1x32xf32>
    %84 = vector.broadcast %83 : vector<1x32xf32> to vector<128x32xf32>
    %85 = arith.addf %82, %84 : vector<128x32xf32>
    %86 = vector.extract_strided_slice %81 {offsets = [0, 0], sizes = [128, 32], strides = [1, 1]} : vector<256x32xf32> to vector<128x32xf32>
    %87 = vector.extract_strided_slice %79 {offsets = [0, 0], sizes = [32, 32], strides = [1, 1]} : vector<288x32xf32> to vector<32x32xf32>
    %cst_46 = arith.constant dense<0.000000e+00> : vector<128x32xf32>
    %88 = tpu.matmul %86, %87, %cst_46 {dimension_numbers = #tpu.dot_dimension_numbers<[1], [0], [0], [1], [0, 0, 1, 1], [], []>} : vector<128x32xf32>, vector<32x32xf32>, vector<128x32xf32> -> vector<128x32xf32>
    %89 = arith.addf %85, %88 : vector<128x32xf32>
    %90 = vector.extract_strided_slice %81 {offsets = [16, 0], sizes = [128, 32], strides = [1, 1]} : vector<256x32xf32> to vector<128x32xf32>
    %91 = vector.extract_strided_slice %79 {offsets = [32, 0], sizes = [32, 32], strides = [1, 1]} : vector<288x32xf32> to vector<32x32xf32>
    %cst_47 = arith.constant dense<0.000000e+00> : vector<128x32xf32>
    %92 = tpu.matmul %90, %91, %cst_47 {dimension_numbers = #tpu.dot_dimension_numbers<[1], [0], [0], [1], [0, 0, 1, 1], [], []>} : vector<128x32xf32>, vector<32x32xf32>, vector<128x32xf32> -> vector<128x32xf32>
    %93 = arith.addf %89, %92 : vector<128x32xf32>
    %94 = vector.extract_strided_slice %81 {offsets = [32, 0], sizes = [128, 32], strides = [1, 1]} : vector<256x32xf32> to vector<128x32xf32>
    %95 = vector.extract_strided_slice %79 {offsets = [64, 0], sizes = [32, 32], strides = [1, 1]} : vector<288x32xf32> to vector<32x32xf32>
    %cst_48 = arith.constant dense<0.000000e+00> : vector<128x32xf32>
    %96 = tpu.matmul %94, %95, %cst_48 {dimension_numbers = #tpu.dot_dimension_numbers<[1], [0], [0], [1], [0, 0, 1, 1], [], []>} : vector<128x32xf32>, vector<32x32xf32>, vector<128x32xf32> -> vector<128x32xf32>
    %97 = arith.addf %93, %96 : vector<128x32xf32>
    %98 = vector.extract_strided_slice %81 {offsets = [48, 0], sizes = [128, 32], strides = [1, 1]} : vector<256x32xf32> to vector<128x32xf32>
    %99 = vector.extract_strided_slice %79 {offsets = [96, 0], sizes = [32, 32], strides = [1, 1]} : vector<288x32xf32> to vector<32x32xf32>
    %cst_49 = arith.constant dense<0.000000e+00> : vector<128x32xf32>
    %100 = tpu.matmul %98, %99, %cst_49 {dimension_numbers = #tpu.dot_dimension_numbers<[1], [0], [0], [1], [0, 0, 1, 1], [], []>} : vector<128x32xf32>, vector<32x32xf32>, vector<128x32xf32> -> vector<128x32xf32>
    %101 = arith.addf %97, %100 : vector<128x32xf32>
    %102 = vector.extract_strided_slice %81 {offsets = [64, 0], sizes = [128, 32], strides = [1, 1]} : vector<256x32xf32> to vector<128x32xf32>
    %103 = vector.extract_strided_slice %79 {offsets = [128, 0], sizes = [32, 32], strides = [1, 1]} : vector<288x32xf32> to vector<32x32xf32>
    %cst_50 = arith.constant dense<0.000000e+00> : vector<128x32xf32>
    %104 = tpu.matmul %102, %103, %cst_50 {dimension_numbers = #tpu.dot_dimension_numbers<[1], [0], [0], [1], [0, 0, 1, 1], [], []>} : vector<128x32xf32>, vector<32x32xf32>, vector<128x32xf32> -> vector<128x32xf32>
    %105 = arith.addf %101, %104 : vector<128x32xf32>
    %106 = vector.extract_strided_slice %81 {offsets = [80, 0], sizes = [128, 32], strides = [1, 1]} : vector<256x32xf32> to vector<128x32xf32>
    %107 = vector.extract_strided_slice %79 {offsets = [160, 0], sizes = [32, 32], strides = [1, 1]} : vector<288x32xf32> to vector<32x32xf32>
    %cst_51 = arith.constant dense<0.000000e+00> : vector<128x32xf32>
    %108 = tpu.matmul %106, %107, %cst_51 {dimension_numbers = #tpu.dot_dimension_numbers<[1], [0], [0], [1], [0, 0, 1, 1], [], []>} : vector<128x32xf32>, vector<32x32xf32>, vector<128x32xf32> -> vector<128x32xf32>
    %109 = arith.addf %105, %108 : vector<128x32xf32>
    %110 = vector.extract_strided_slice %81 {offsets = [96, 0], sizes = [128, 32], strides = [1, 1]} : vector<256x32xf32> to vector<128x32xf32>
    %111 = vector.extract_strided_slice %79 {offsets = [192, 0], sizes = [32, 32], strides = [1, 1]} : vector<288x32xf32> to vector<32x32xf32>
    %cst_52 = arith.constant dense<0.000000e+00> : vector<128x32xf32>
    %112 = tpu.matmul %110, %111, %cst_52 {dimension_numbers = #tpu.dot_dimension_numbers<[1], [0], [0], [1], [0, 0, 1, 1], [], []>} : vector<128x32xf32>, vector<32x32xf32>, vector<128x32xf32> -> vector<128x32xf32>
    %113 = arith.addf %109, %112 : vector<128x32xf32>
    %114 = vector.extract_strided_slice %81 {offsets = [112, 0], sizes = [128, 32], strides = [1, 1]} : vector<256x32xf32> to vector<128x32xf32>
    %115 = vector.extract_strided_slice %79 {offsets = [224, 0], sizes = [32, 32], strides = [1, 1]} : vector<288x32xf32> to vector<32x32xf32>
    %cst_53 = arith.constant dense<0.000000e+00> : vector<128x32xf32>
    %116 = tpu.matmul %114, %115, %cst_53 {dimension_numbers = #tpu.dot_dimension_numbers<[1], [0], [0], [1], [0, 0, 1, 1], [], []>} : vector<128x32xf32>, vector<32x32xf32>, vector<128x32xf32> -> vector<128x32xf32>
    %117 = arith.addf %113, %116 : vector<128x32xf32>
    %118 = vector.extract_strided_slice %81 {offsets = [128, 0], sizes = [128, 32], strides = [1, 1]} : vector<256x32xf32> to vector<128x32xf32>
    %119 = vector.extract_strided_slice %79 {offsets = [256, 0], sizes = [32, 32], strides = [1, 1]} : vector<288x32xf32> to vector<32x32xf32>
    %cst_54 = arith.constant dense<0.000000e+00> : vector<128x32xf32>
    %120 = tpu.matmul %118, %119, %cst_54 {dimension_numbers = #tpu.dot_dimension_numbers<[1], [0], [0], [1], [0, 0, 1, 1], [], []>} : vector<128x32xf32>, vector<32x32xf32>, vector<128x32xf32> -> vector<128x32xf32>
    %121 = arith.addf %117, %120 : vector<128x32xf32>
    %c0_55 = arith.constant 0 : index
    %c0_56 = arith.constant 0 : index
    %122 = vector.load %arg13[%c0_55, %c0_56] : memref<16x32xf32, #tpu.memory_space<vmem>>, vector<16x32xf32>
    %cst_57 = arith.constant dense<0.000000e+00> : vector<128x32xf32>
    %123 = tpu.matmul %64, %122, %cst_57 {dimension_numbers = #tpu.dot_dimension_numbers<[1], [0], [0], [1], [0, 0, 1, 1], [], []>} : vector<128x16xf32>, vector<16x32xf32>, vector<128x32xf32> -> vector<128x32xf32>
    %c0_58 = arith.constant 0 : index
    %c0_59 = arith.constant 0 : index
    %124 = vector.load %arg14[%c0_58, %c0_59] : memref<1x32xf32, #tpu.memory_space<vmem>>, vector<1x32xf32>
    %125 = vector.broadcast %124 : vector<1x32xf32> to vector<128x32xf32>
    %126 = arith.addf %123, %125 : vector<128x32xf32>
    %127 = arith.addf %121, %126 : vector<128x32xf32>
    %cst_60 = arith.constant 0.000000e+00 : f32
    %128 = vector.broadcast %cst_60 : f32 to vector<128x32xf32>
    %129 = arith.maximumf %127, %128 : vector<128x32xf32>
    %c0_61 = arith.constant 0 : index
    %c0_62 = arith.constant 0 : index
    %c0_63 = arith.constant 0 : index
    %130 = vector.load %arg16[%c0_61, %c0_62, %c0_63] : memref<1x128x32xf32, #tpu.memory_space<vmem>>, vector<1x128x32xf32>
    %131 = vector.shape_cast %130 : vector<1x128x32xf32> to vector<128x32xf32>
    %132 = vector.shape_cast %129 : vector<128x32xf32> to vector<1x128x32xf32>
    tpu.vector_store %arg16[%c0_61, %c0_62, %c0_63], %132 {strides = array<i32>} : memref<1x128x32xf32, #tpu.memory_space<vmem>>, vector<1x128x32xf32>,
    return
  }
  func.func @transform_0(%arg0: i32) -> (i32, i32, i32, i32) {
    %c0_i32 = arith.constant 0 : i32
    %c0_i32_0 = arith.constant 0 : i32
    %c0_i32_1 = arith.constant 0 : i32
    %c0_i32_2 = arith.constant 0 : i32
    return %arg0, %c0_i32, %c0_i32_0, %c0_i32_1 : i32, i32, i32, i32
  }
  func.func @transform_1(%arg0: i32) -> (i32, i32, i32, i32) {
    %c0_i32 = arith.constant 0 : i32
    %c0_i32_0 = arith.constant 0 : i32
    %c0_i32_1 = arith.constant 0 : i32
    %c0_i32_2 = arith.constant 0 : i32
    return %arg0, %c0_i32, %c0_i32_0, %c0_i32_1 : i32, i32, i32, i32
  }
  func.func @transform_2(%arg0: i32) -> (i32, i32) {
    %c0_i32 = arith.constant 0 : i32
    %c0_i32_0 = arith.constant 0 : i32
    %c0_i32_1 = arith.constant 0 : i32
    return %c0_i32, %c0_i32_0 : i32, i32
  }
  func.func @transform_3(%arg0: i32) -> (i32, i32) {
    %c0_i32 = arith.constant 0 : i32
    %c0_i32_0 = arith.constant 0 : i32
    %c0_i32_1 = arith.constant 0 : i32
    return %c0_i32, %c0_i32_0 : i32, i32
  }
  func.func @transform_4(%arg0: i32) -> (i32, i32) {
    %c0_i32 = arith.constant 0 : i32
    %c0_i32_0 = arith.constant 0 : i32
    %c0_i32_1 = arith.constant 0 : i32
    return %c0_i32, %c0_i32_0 : i32, i32
  }
  func.func @transform_5(%arg0: i32) -> (i32, i32) {
    %c0_i32 = arith.constant 0 : i32
    %c0_i32_0 = arith.constant 0 : i32
    %c0_i32_1 = arith.constant 0 : i32
    return %c0_i32, %c0_i32_0 : i32, i32
  }
  func.func @transform_6(%arg0: i32) -> (i32, i32) {
    %c0_i32 = arith.constant 0 : i32
    %c0_i32_0 = arith.constant 0 : i32
    %c0_i32_1 = arith.constant 0 : i32
    return %c0_i32, %c0_i32_0 : i32, i32
  }
  func.func @transform_7(%arg0: i32) -> (i32, i32) {
    %c0_i32 = arith.constant 0 : i32
    %c0_i32_0 = arith.constant 0 : i32
    %c0_i32_1 = arith.constant 0 : i32
    return %c0_i32, %c0_i32_0 : i32, i32
  }
  func.func @transform_8(%arg0: i32) -> (i32, i32) {
    %c0_i32 = arith.constant 0 : i32
    %c0_i32_0 = arith.constant 0 : i32
    %c0_i32_1 = arith.constant 0 : i32
    return %c0_i32, %c0_i32_0 : i32, i32
  }
  func.func @transform_9(%arg0: i32) -> (i32, i32) {
    %c0_i32 = arith.constant 0 : i32
    %c0_i32_0 = arith.constant 0 : i32
    %c0_i32_1 = arith.constant 0 : i32
    return %c0_i32, %c0_i32_0 : i32, i32
  }
  func.func @transform_10(%arg0: i32) -> (i32, i32) {
    %c0_i32 = arith.constant 0 : i32
    %c0_i32_0 = arith.constant 0 : i32
    %c0_i32_1 = arith.constant 0 : i32
    return %c0_i32, %c0_i32_0 : i32, i32
  }
  func.func @transform_11(%arg0: i32) -> (i32, i32) {
    %c0_i32 = arith.constant 0 : i32
    %c0_i32_0 = arith.constant 0 : i32
    %c0_i32_1 = arith.constant 0 : i32
    return %c0_i32, %c0_i32_0 : i32, i32
  }
  func.func @transform_12(%arg0: i32) -> (i32, i32) {
    %c0_i32 = arith.constant 0 : i32
    %c0_i32_0 = arith.constant 0 : i32
    %c0_i32_1 = arith.constant 0 : i32
    return %c0_i32, %c0_i32_0 : i32, i32
  }
  func.func @transform_13(%arg0: i32) -> (i32, i32) {
    %c0_i32 = arith.constant 0 : i32
    %c0_i32_0 = arith.constant 0 : i32
    %c0_i32_1 = arith.constant 0 : i32
    return %c0_i32, %c0_i32_0 : i32, i32
  }
  func.func @transform_14(%arg0: i32) -> i32 {
    %c0_i32 = arith.constant 0 : i32
    %c0_i32_0 = arith.constant 0 : i32
    return %c0_i32 : i32
  }
  func.func @transform_15(%arg0: i32) -> (i32, i32, i32) {
    %c0_i32 = arith.constant 0 : i32
    %c0_i32_0 = arith.constant 0 : i32
    %c0_i32_1 = arith.constant 0 : i32
    return %arg0, %c0_i32, %c0_i32_0 : i32, i32, i32
  }
}

</mosaic_0001>

<bundles_post_ra>
// kernel: tile.8
= control target key start
LH: loop header
LB: loop body
LE: loop exit
PB: predicated region body
PF: predicated region fallthrough
CT: control target
= control target key end

     0   :  { %s28_s0 = inlined_call_operand.vmem [shape: f32[32], index: 0, kind: input, shape index: {}]   ;;  %s29_s1 = inlined_call_operand.vmem [shape: f32[16,32], index: 1, kind: output, shape index: {}]  }
   0x1   :  { %v4_v0 = vld [vmem:[%s28_s0] ss:$0 sm:$0xff] }
   0x2   :  { %5 = vst [vmem:[%s29_s1] sm:$0xff] %v4_v0  ;;  %8 = vst [vmem:[%s29_s1 + $0x8] sm:$0xff] %v4_v0 }

// kernel: tile.9
= control target key start
LH: loop header
LB: loop body
LE: loop exit
PB: predicated region body
PF: predicated region fallthrough
CT: control target
= control target key end

     0   :  { %s57_s8 = smov 96   ;;  %vm3_vm0 = vcmask 261120   ;;  %s59_s15 = smov 64   ;;  %vm9_vm1 = vcmask 1048320   ;;  %vm15_vm2 = vcmask 785920   ;;  %vm21_vm3 = vcmask 523520   ;;  %s94_s0 = inlined_call_operand.vmem [shape: f32[16,32], index: 0, kind: input, shape index: {}]   ;;  %s95_s1 = inlined_call_operand.vmem [shape: f32[1,512], index: 1, kind: output, shape index: {}]  }
   0x1   :  { %v48_v0 = vld [vmem:[%s94_s0 + $0x3] ss:$4 sm:$0xf]   ;;  %v49_v1 = vld [vmem:[%s94_s0 + $0x2] ss:$4 sm:$0xf]  }
   0x2   :  { %7 = vrot.lane.b32.xlu0 %v48_v0, %s57_s8  ;;  %v50_v2 = vld [vmem:[%s94_s0 + $0x1] ss:$4 sm:$0xf]   ;;  %v2_v3 = vld [vmem:[%s94_s0] ss:$4 sm:$0xf]  }
   0x3   :  { %s58_s0 = smov 32   ;;  %4 = vst.msk [vmem:[#allocation0] ss:$8 sm:$0xf] %vm3_vm0, %v2_v3  }
   0x4   :  { %19 = vrot.lane.b32.xlu1 %v50_v2, %s58_s0 }
   0x6   :  { %13 = vrot.lane.b32.xlu0 %v49_v1, %s59_s15 }
  0x74   :  { %v8_v4 = vpop.permute.xlu0 %7  }
  0x75   :  { %10 = vst.msk [vmem:[#allocation0] ss:$8 sm:$0xf] %vm9_vm1, %v8_v4  }
  0x76   :  { %v20_v5 = vpop.permute.xlu1 %19  }
  0x78   :  { %v14_v6 = vpop.permute.xlu0 %13  }
  0x79   :  { %16 = vst.msk [vmem:[#allocation0] ss:$8 sm:$0xf] %vm15_vm2, %v14_v6  }
  0x7a   :  { %22 = vst.msk [vmem:[#allocation0] ss:$8 sm:$0xf] %vm21_vm3, %v20_v5  }
  0x81   :  { %v26_v7 = vld [vmem:[#allocation0] sm:$0x1]  ;;  %v30_v8 = vld [vmem:[#allocation0 + $0x8] sm:$0x1]  ;;  %v35_v9 = vld [vmem:[#allocation0 + $0x10] sm:$0x1] }
  0x82   :  { %28 = vst [vmem:[%s95_s1] sm:$0x1] %v26_v7  ;;  %51 = vst [vmem:[%s95_s1 + $0x1] sm:$0x1] %v30_v8  ;;  %v41_v10 = vld [vmem:[#allocation0 + $0x18] sm:$0x1] }
  0x83   :  { %52 = vst [vmem:[%s95_s1 + $0x2] sm:$0x1] %v35_v9  ;;  %53 = vst [vmem:[%s95_s1 + $0x3] sm:$0x1] %v41_v10 }

// kernel: tcn_gcn_forward.2
= control target key start
LH: loop header
LB: loop body
LE: loop exit
PB: predicated region body
PF: predicated region fallthrough
CT: control target
= control target key end

     0   :  { %s701_s12 = smov 0   ;;  %s1123_s0 = inlined_call_operand.vmem [shape: f32[2,8,256], index: 0, kind: input, shape index: {}]   ;;  %s1124_s1 = inlined_call_operand.vmem [shape: f32[256,512], index: 1, kind: input, shape index: {}]   ;;  %s1125_s2 = inlined_call_operand.vmem [shape: f32[1,512], index: 2, kind: input, shape index: {}]   ;;  %s1126_s3 = inlined_call_operand.vmem [shape: f32[2,8,512], index: 3, kind: output, shape index: {}]  }
   0x1 LB: > { %s524_s13 = sadd.s32 4294967295, %s679_s12   ;;  %p528_p0 = scmp.ge.s32.totalorder %s679_s12, 1  ;;  %s679_s12 = sphi %s701_s12, %s13_s12  }
   0x2   : > { %p137_p1 = scmp.lt.s32.totalorder %s679_s12, 3 }
   0x4   : > { %p138_p2 = pnand %p528_p0, %p137_p1 }
   0x5   : > { %v174_v0 = vld [vmem:[%s1124_s1 + $0x8] sm:$0xff] (!%p138_p2)  ;;  %v176_v2 = vld [vmem:[%s1124_s1 + $0x18] sm:$0xff] (!%p138_p2)  ;;  %v173_v5 = vld [vmem:[%s1124_s1] sm:$0xff] (!%p138_p2)  ;;  %p915_p3 = scmp.lt.s32.totalorder (!%p138_p2), %s524_s13, 1 }
   0x6   : > { %141 = sbr.rel (%p138_p2) target bundleno = 290 (0x122), region = 32  ;;  %v178_v1 = vld [vmem:[%s1124_s1 + $0x28] sm:$0xff] (!%p138_p2)  ;;  %v180_v4 = vld [vmem:[%s1124_s1 + $0x38] sm:$0xff] (!%p138_p2)  ;;  %v177_v6 = vld [vmem:[%s1124_s1 + $0x20] sm:$0xff] (!%p138_p2) }
   0x7   : > { %v537_v3 = vpack.c.bf16 (!%p138_p2), %v178_v1, %v174_v0  ;;  %v601_v7 = vpack.c.bf16 (!%p138_p2), %v180_v4, %v176_v2  ;;  %v539_v8 = vpack.c.bf16 (!%p138_p2), %v177_v6, %v173_v5  ;;  %v175_v9 = vld [vmem:[%s1124_s1 + $0x10] sm:$0xff] (!%p138_p2)  ;;  %v182_v11 = vld [vmem:[%s1124_s1 + $0x48] sm:$0xff] (!%p138_p2)  ;;  %v184_v14 = vld [vmem:[%s1124_s1 + $0x58] sm:$0xff] (!%p138_p2) }
   0x8   : > { %v179_v10 = vld [vmem:[%s1124_s1 + $0x30] sm:$0xff] (!%p138_p2)  ;;  %v186_v13 = vld [vmem:[%s1124_s1 + $0x68] sm:$0xff] (!%p138_p2)  ;;  %v188_v15 = vld [vmem:[%s1124_s1 + $0x78] sm:$0xff] (!%p138_p2) }
   0x9   : > { %538 = vmatprep.subr.bf16.mxu0 (!%p138_p2), %v537_v3  ;;  %v603_v12 = vpack.c.bf16 (!%p138_p2), %v179_v10, %v175_v9  ;;  %602 = vmatprep.subr.bf16.mxu1 (!%p138_p2), %v601_v7  ;;  %v541_v16 = vpack.c.bf16 (!%p138_p2), %v186_v13, %v182_v11  ;;  %v605_v17 = vpack.c.bf16 (!%p138_p2), %v188_v15, %v184_v14  ;;  %v181_v18 = vld [vmem:[%s1124_s1 + $0x40] sm:$0xff] (!%p138_p2)  ;;  %v183_v20 = vld [vmem:[%s1124_s1 + $0x50] sm:$0xff] (!%p138_p2)  ;;  %v190_v23 = vld [vmem:[%s1124_s1 + $0x88] sm:$0xff] (!%p138_p2) }
   0xa   : > { %540 = vmatpush1.bf16.msra.mxu0 (!%p138_p2), %v539_v8  ;;  %v185_v19 = vld [vmem:[%s1124_s1 + $0x60] sm:$0xff] (!%p138_p2)  ;;  %v187_v22 = vld [vmem:[%s1124_s1 + $0x70] sm:$0xff] (!%p138_p2)  ;;  %v194_v24 = vld [vmem:[%s1124_s1 + $0xa8] sm:$0xff] (!%p138_p2) }
   0xb   : > { %604 = vmatpush1.bf16.msra.mxu1 (!%p138_p2), %v603_v12  ;;  %v543_v21 = vpack.c.bf16 (!%p138_p2), %v185_v19, %v181_v18  ;;  %542 = vmatprep.subr.bf16.mxu0 (!%p138_p2), %v541_v16  ;;  %v607_v25 = vpack.c.bf16 (!%p138_p2), %v187_v22, %v183_v20  ;;  %v545_v26 = vpack.c.bf16 (!%p138_p2), %v194_v24, %v190_v23  ;;  %v192_v27 = vld [vmem:[%s1124_s1 + $0x98] sm:$0xff] (!%p138_p2)  ;;  %v189_v29 = vld [vmem:[%s1124_s1 + $0x80] sm:$0xff] (!%p138_p2)  ;;  %v191_v32 = vld [vmem:[%s1124_s1 + $0x90] sm:$0xff] (!%p138_p2) }
   0xc   : > { %606 = vmatprep.subr.bf16.mxu1 (!%p138_p2), %v605_v17  ;;  %v196_v28 = vld [vmem:[%s1124_s1 + $0xb8] sm:$0xff] (!%p138_p2)  ;;  %v193_v31 = vld [vmem:[%s1124_s1 + $0xa0] sm:$0xff] (!%p138_p2)  ;;  %v195_v33 = vld [vmem:[%s1124_s1 + $0xb0] sm:$0xff] (!%p138_p2) }
   0xd   : > { %v609_v30 = vpack.c.bf16 %v196_v28, %v192_v27  ;;  %v547_v34 = vpack.c.bf16 %v193_v31, %v189_v29  ;;  %v198_v35 = vld [vmem:[%s1124_s1 + $0xc8] sm:$0xff]  ;;  %v200_v37 = vld [vmem:[%s1124_s1 + $0xd8] sm:$0xff]  ;;  %v611_v38 = vpack.c.bf16 %v195_v33, %v191_v32  ;;  %v197_v41 = vld [vmem:[%s1124_s1 + $0xc0] sm:$0xff]  ;;  %s1129_s13 = smov (!%p915_p3, %s524_s13), 1 }
   0xe   : > { %544 = vmatpush1.bf16.msra.mxu0 %v543_v21  ;;  %v202_v36 = vld [vmem:[%s1124_s1 + $0xe8] sm:$0xff]  ;;  %v204_v40 = vld [vmem:[%s1124_s1 + $0xf8] sm:$0xff]  ;;  %v201_v42 = vld [vmem:[%s1124_s1 + $0xe0] sm:$0xff]  ;;  %s535_s6 = sshll.u32 %s1129_s13, 4  ;;  %s536_s30 = sshll.u32 %s1129_s13, 5 }
   0xf   : > { %608 = vmatpush1.bf16.msra.mxu1 %v607_v25  ;;  %546 = vmatprep.subr.bf16.mxu0 %v545_v26  ;;  %v549_v39 = vpack.c.bf16 %v202_v36, %v198_v35  ;;  %v613_v43 = vpack.c.bf16 %v204_v40, %v200_v37  ;;  %v199_v44 = vld [vmem:[%s1124_s1 + $0xd0] sm:$0xff]  ;;  %v206_v46 = vld [vmem:[%s1124_s1 + $0x108] sm:$0xff]  ;;  %v208_v48 = vld [vmem:[%s1124_s1 + $0x118] sm:$0xff]  ;;  %v551_v50 = vpack.c.bf16 %v201_v42, %v197_v41  ;;  %s1001_s27 = scalar_lea.vmem %s1123_s0, %s535_s6  ;;  %s170_s5 = scalar_lea.vmem %s1126_s3, %s536_s30 }
  0x10   : > { %610 = vmatprep.subr.bf16.mxu1 %v609_v30  ;;  %v203_v45 = vld [vmem:[%s1124_s1 + $0xf0] sm:$0xff]  ;;  %v210_v47 = vld [vmem:[%s1124_s1 + $0x128] sm:$0xff]  ;;  %v212_v49 = vld [vmem:[%s1124_s1 + $0x138] sm:$0xff] }
  0x11   : > { %v615_v51 = vpack.c.bf16 %v203_v45, %v199_v44  ;;  %v553_v52 = vpack.c.bf16 %v210_v47, %v206_v46  ;;  %v205_v53 = vld [vmem:[%s1124_s1 + $0x100] sm:$0xff]  ;;  %v207_v55 = vld [vmem:[%s1124_s1 + $0x110] sm:$0xff]  ;;  %v617_v56 = vpack.c.bf16 %v212_v49, %v208_v48  ;;  %v214_v58 = vld [vmem:[%s1124_s1 + $0x148] sm:$0xff] }
  0x12   : > { %548 = vmatpush1.bf16.msra.mxu0 %v547_v34  ;;  %v209_v54 = vld [vmem:[%s1124_s1 + $0x120] sm:$0xff]  ;;  %v211_v57 = vld [vmem:[%s1124_s1 + $0x130] sm:$0xff]  ;;  %v218_v59 = vld [vmem:[%s1124_s1 + $0x168] sm:$0xff] }
  0x13   : > { %612 = vmatpush1.bf16.msra.mxu1 %v611_v38  ;;  %550 = vmatprep.subr.bf16.mxu0 %v549_v39  ;;  %v216_v60 = vld [vmem:[%s1124_s1 + $0x158] sm:$0xff]  ;;  %v555_v62 = vpack.c.bf16 %v209_v54, %v205_v53  ;;  %v619_v63 = vpack.c.bf16 %v211_v57, %v207_v55  ;;  %v557_v0 = vpack.c.bf16 %v218_v59, %v214_v58  ;;  %v213_v1 = vld [vmem:[%s1124_s1 + $0x140] sm:$0xff]  ;;  %v215_v3 = vld [vmem:[%s1124_s1 + $0x150] sm:$0xff] }
  0x14   : > { %614 = vmatprep.subr.bf16.mxu1 %v613_v43  ;;  %v220_v61 = vld [vmem:[%s1124_s1 + $0x178] sm:$0xff]  ;;  %v217_v2 = vld [vmem:[%s1124_s1 + $0x160] sm:$0xff]  ;;  %v219_v5 = vld [vmem:[%s1124_s1 + $0x170] sm:$0xff] }
  0x15   : > { %v621_v4 = vpack.c.bf16 %v220_v61, %v216_v60  ;;  %v222_v6 = vld [vmem:[%s1124_s1 + $0x188] sm:$0xff]  ;;  %v224_v8 = vld [vmem:[%s1124_s1 + $0x198] sm:$0xff]  ;;  %v559_v10 = vpack.c.bf16 %v217_v2, %v213_v1  ;;  %v623_v11 = vpack.c.bf16 %v219_v5, %v215_v3  ;;  %v221_v13 = vld [vmem:[%s1124_s1 + $0x180] sm:$0xff] }
  0x16   : > { %552 = vmatpush1.bf16.msra.mxu0 %v551_v50  ;;  %v226_v7 = vld [vmem:[%s1124_s1 + $0x1a8] sm:$0xff]  ;;  %v228_v9 = vld [vmem:[%s1124_s1 + $0x1b8] sm:$0xff]  ;;  %v225_v14 = vld [vmem:[%s1124_s1 + $0x1a0] sm:$0xff] }
  0x17   : > { %616 = vmatpush1.bf16.msra.mxu1 %v615_v51  ;;  %554 = vmatprep.subr.bf16.mxu0 %v553_v52  ;;  %v561_v12 = vpack.c.bf16 %v226_v7, %v222_v6  ;;  %v223_v15 = vld [vmem:[%s1124_s1 + $0x190] sm:$0xff]  ;;  %v625_v16 = vpack.c.bf16 %v228_v9, %v224_v8  ;;  %v230_v18 = vld [vmem:[%s1124_s1 + $0x1c8] sm:$0xff]  ;;  %v232_v20 = vld [vmem:[%s1124_s1 + $0x1d8] sm:$0xff]  ;;  %v563_v22 = vpack.c.bf16 %v225_v14, %v221_v13 }
  0x18   : > { %618 = vmatprep.subr.bf16.mxu1 %v617_v56  ;;  %v227_v17 = vld [vmem:[%s1124_s1 + $0x1b0] sm:$0xff]  ;;  %v234_v19 = vld [vmem:[%s1124_s1 + $0x1e8] sm:$0xff]  ;;  %v236_v21 = vld [vmem:[%s1124_s1 + $0x1f8] sm:$0xff] }
  0x19   : > { %v627_v23 = vpack.c.bf16 %v227_v17, %v223_v15  ;;  %v565_v24 = vpack.c.bf16 %v234_v19, %v230_v18  ;;  %v229_v25 = vld [vmem:[%s1124_s1 + $0x1c0] sm:$0xff]  ;;  %v231_v27 = vld [vmem:[%s1124_s1 + $0x1d0] sm:$0xff]  ;;  %v629_v28 = vpack.c.bf16 %v236_v21, %v232_v20  ;;  %v238_v30 = vld [vmem:[%s1124_s1 + $0x208] sm:$0xff] }
  0x1a   : > { %556 = vmatpush1.bf16.msra.mxu0 %v555_v62  ;;  %v233_v26 = vld [vmem:[%s1124_s1 + $0x1e0] sm:$0xff]  ;;  %v235_v29 = vld [vmem:[%s1124_s1 + $0x1f0] sm:$0xff]  ;;  %v242_v31 = vld [vmem:[%s1124_s1 + $0x228] sm:$0xff] }
  0x1b   : > { %620 = vmatpush1.bf16.msra.mxu1 %v619_v63  ;;  %558 = vmatprep.subr.bf16.mxu0 %v557_v0  ;;  %v240_v32 = vld [vmem:[%s1124_s1 + $0x218] sm:$0xff]  ;;  %v567_v34 = vpack.c.bf16 %v233_v26, %v229_v25  ;;  %v631_v35 = vpack.c.bf16 %v235_v29, %v231_v27  ;;  %v569_v36 = vpack.c.bf16 %v242_v31, %v238_v30  ;;  %v237_v37 = vld [vmem:[%s1124_s1 + $0x200] sm:$0xff]  ;;  %v239_v39 = vld [vmem:[%s1124_s1 + $0x210] sm:$0xff] }
  0x1c   : > { %622 = vmatprep.subr.bf16.mxu1 %v621_v4  ;;  %v244_v33 = vld [vmem:[%s1124_s1 + $0x238] sm:$0xff]  ;;  %v241_v38 = vld [vmem:[%s1124_s1 + $0x220] sm:$0xff]  ;;  %v243_v41 = vld [vmem:[%s1124_s1 + $0x230] sm:$0xff] }
  0x1d   : > { %v633_v40 = vpack.c.bf16 %v244_v33, %v240_v32  ;;  %v246_v42 = vld [vmem:[%s1124_s1 + $0x248] sm:$0xff]  ;;  %v248_v44 = vld [vmem:[%s1124_s1 + $0x258] sm:$0xff]  ;;  %v571_v46 = vpack.c.bf16 %v241_v38, %v237_v37  ;;  %v635_v47 = vpack.c.bf16 %v243_v41, %v239_v39  ;;  %v245_v49 = vld [vmem:[%s1124_s1 + $0x240] sm:$0xff] }
  0x1e   : > { %560 = vmatpush1.bf16.msra.mxu0 %v559_v10  ;;  %v250_v43 = vld [vmem:[%s1124_s1 + $0x268] sm:$0xff]  ;;  %v252_v45 = vld [vmem:[%s1124_s1 + $0x278] sm:$0xff]  ;;  %v249_v50 = vld [vmem:[%s1124_s1 + $0x260] sm:$0xff] }
  0x1f   : > { %624 = vmatpush1.bf16.msra.mxu1 %v623_v11  ;;  %562 = vmatprep.subr.bf16.mxu0 %v561_v12  ;;  %v573_v48 = vpack.c.bf16 %v250_v43, %v246_v42  ;;  %v247_v51 = vld [vmem:[%s1124_s1 + $0x250] sm:$0xff]  ;;  %v637_v52 = vpack.c.bf16 %v252_v45, %v248_v44  ;;  %v254_v54 = vld [vmem:[%s1124_s1 + $0x288] sm:$0xff]  ;;  %v256_v56 = vld [vmem:[%s1124_s1 + $0x298] sm:$0xff]  ;;  %v575_v58 = vpack.c.bf16 %v249_v50, %v245_v49 }
  0x20   : > { %626 = vmatprep.subr.bf16.mxu1 %v625_v16  ;;  %v251_v53 = vld [vmem:[%s1124_s1 + $0x270] sm:$0xff]  ;;  %v258_v55 = vld [vmem:[%s1124_s1 + $0x2a8] sm:$0xff]  ;;  %v260_v57 = vld [vmem:[%s1124_s1 + $0x2b8] sm:$0xff] }
  0x21   : > { %v639_v59 = vpack.c.bf16 %v251_v53, %v247_v51  ;;  %v577_v60 = vpack.c.bf16 %v258_v55, %v254_v54  ;;  %v253_v61 = vld [vmem:[%s1124_s1 + $0x280] sm:$0xff]  ;;  %v255_v63 = vld [vmem:[%s1124_s1 + $0x290] sm:$0xff]  ;;  %v641_v0 = vpack.c.bf16 %v260_v57, %v256_v56  ;;  %v262_v2 = vld [vmem:[%s1124_s1 + $0x2c8] sm:$0xff] }
  0x22   : > { %564 = vmatpush1.bf16.msra.mxu0 %v563_v22  ;;  %v257_v62 = vld [vmem:[%s1124_s1 + $0x2a0] sm:$0xff]  ;;  %v259_v1 = vld [vmem:[%s1124_s1 + $0x2b0] sm:$0xff]  ;;  %v266_v3 = vld [vmem:[%s1124_s1 + $0x2e8] sm:$0xff] }
  0x23   : > { %628 = vmatpush1.bf16.msra.mxu1 %v627_v23  ;;  %566 = vmatprep.subr.bf16.mxu0 %v565_v24  ;;  %v264_v4 = vld [vmem:[%s1124_s1 + $0x2d8] sm:$0xff]  ;;  %v579_v6 = vpack.c.bf16 %v257_v62, %v253_v61  ;;  %v261_v7 = vld [vmem:[%s1124_s1 + $0x2c0] sm:$0xff]  ;;  %v643_v8 = vpack.c.bf16 %v259_v1, %v255_v63  ;;  %v581_v9 = vpack.c.bf16 %v266_v3, %v262_v2  ;;  %v263_v11 = vld [vmem:[%s1124_s1 + $0x2d0] sm:$0xff]  ;;  %v303_v2 = vlaneseq }
  0x24   : > { %630 = vmatprep.subr.bf16.mxu1 %v629_v28  ;;  %v268_v5 = vld [vmem:[%s1124_s1 + $0x2f8] sm:$0xff]  ;;  %v265_v10 = vld [vmem:[%s1124_s1 + $0x2e0] sm:$0xff]  ;;  %v267_v12 = vld [vmem:[%s1124_s1 + $0x2f0] sm:$0xff] }
  0x25   : > { %v645_v13 = vpack.c.bf16 %v268_v5, %v264_v4  ;;  %v270_v14 = vld [vmem:[%s1124_s1 + $0x308] sm:$0xff]  ;;  %v272_v17 = vld [vmem:[%s1124_s1 + $0x318] sm:$0xff]  ;;  %v583_v19 = vpack.c.bf16 %v265_v10, %v261_v7  ;;  %v647_v20 = vpack.c.bf16 %v267_v12, %v263_v11  ;;  %v269_v22 = vld [vmem:[%s1124_s1 + $0x300] sm:$0xff]  ;;  %v304_v3 = vshrl.u32 %v303_v2, 7 }
  0x26   : > { %568 = vmatpush1.bf16.msra.mxu0 %v567_v34  ;;  %v274_v15 = vld [vmem:[%s1124_s1 + $0x328] sm:$0xff]  ;;  %v276_v18 = vld [vmem:[%s1124_s1 + $0x338] sm:$0xff]  ;;  %v273_v23 = vld [vmem:[%s1124_s1 + $0x320] sm:$0xff] }
  0x27   : > { %632 = vmatpush1.bf16.msra.mxu1 %v631_v35  ;;  %570 = vmatprep.subr.bf16.mxu0 %v569_v36  ;;  %v172_v16 = vld [vmem:[%s1001_s27 + $0x8] sm:$0xff]  ;;  %v585_v21 = vpack.c.bf16 %v274_v15, %v270_v14  ;;  %v271_v24 = vld [vmem:[%s1124_s1 + $0x310] sm:$0xff]  ;;  %v649_v25 = vpack.c.bf16 %v276_v18, %v272_v17  ;;  %v280_v29 = vld [vmem:[%s1124_s1 + $0x358] sm:$0xff]  ;;  %v587_v31 = vpack.c.bf16 %v273_v23, %v269_v22  ;;  %v305_v4 = vsub.s32 0, %v304_v3 }
  0x28   : > { %634 = vmatprep.subr.bf16.mxu1 %v633_v40  ;;  %387 = vmatprep.mubr.f32.mxu0 %v172_v16  ;;  %v275_v26 = vld [vmem:[%s1124_s1 + $0x330] sm:$0xff]  ;;  %v278_v27 = vld [vmem:[%s1124_s1 + $0x348] sm:$0xff]  ;;  %v284_v30 = vld [vmem:[%s1124_s1 + $0x378] sm:$0xff]  ;;  %v309_v7 = vsub.s32 1, %v304_v3 }
  0x29   : > { %458 = vmatprep.mubr.f32.mxu1 %v172_v16  ;;  %v282_v28 = vld [vmem:[%s1124_s1 + $0x368] sm:$0xff]  ;;  %v651_v32 = vpack.c.bf16 %v275_v26, %v271_v24  ;;  %v277_v34 = vld [vmem:[%s1124_s1 + $0x340] sm:$0xff]  ;;  %v279_v36 = vld [vmem:[%s1124_s1 + $0x350] sm:$0xff]  ;;  %v653_v37 = vpack.c.bf16 %v284_v30, %v280_v29 }
  0x2a   : > { %572 = vmatpush1.bf16.msra.mxu0 %v571_v46  ;;  %v589_v33 = vpack.c.bf16 %v282_v28, %v278_v27  ;;  %v281_v35 = vld [vmem:[%s1124_s1 + $0x360] sm:$0xff]  ;;  %v283_v38 = vld [vmem:[%s1124_s1 + $0x370] sm:$0xff]  ;;  %v286_v39 = vld [vmem:[%s1124_s1 + $0x388] sm:$0xff] }
  0x2b   : > { %636 = vmatpush1.bf16.msra.mxu1 %v635_v47  ;;  %574 = vmatprep.subr.bf16.mxu0 %v573_v48  ;;  %v290_v40 = vld [vmem:[%s1124_s1 + $0x3a8] sm:$0xff]  ;;  %v288_v41 = vld [vmem:[%s1124_s1 + $0x398] sm:$0xff]  ;;  %v591_v43 = vpack.c.bf16 %v281_v35, %v277_v34  ;;  %v655_v44 = vpack.c.bf16 %v283_v38, %v279_v36  ;;  %v285_v46 = vld [vmem:[%s1124_s1 + $0x380] sm:$0xff] }
  0x2c   : > { %638 = vmatprep.subr.bf16.mxu1 %v637_v52  ;;  %v292_v42 = vld [vmem:[%s1124_s1 + $0x3b8] sm:$0xff]  ;;  %v593_v45 = vpack.c.bf16 %v290_v40, %v286_v39  ;;  %v289_v47 = vld [vmem:[%s1124_s1 + $0x3a0] sm:$0xff]  ;;  %v287_v48 = vld [vmem:[%s1124_s1 + $0x390] sm:$0xff] }
  0x2d   : > { %v657_v49 = vpack.c.bf16 %v292_v42, %v288_v41  ;;  %v291_v50 = vld [vmem:[%s1124_s1 + $0x3b0] sm:$0xff]  ;;  %v294_v51 = vld [vmem:[%s1124_s1 + $0x3c8] sm:$0xff]  ;;  %v296_v53 = vld [vmem:[%s1124_s1 + $0x3d8] sm:$0xff]  ;;  %v595_v55 = vpack.c.bf16 %v289_v47, %v285_v46 }
  0x2e   : > { %576 = vmatpush1.bf16.msra.mxu0 %v575_v58  ;;  %v298_v52 = vld [vmem:[%s1124_s1 + $0x3e8] sm:$0xff]  ;;  %v300_v54 = vld [vmem:[%s1124_s1 + $0x3f8] sm:$0xff]  ;;  %v659_v56 = vpack.c.bf16 %v291_v50, %v287_v48  ;;  %v293_v58 = vld [vmem:[%s1124_s1 + $0x3c0] sm:$0xff] }
  0x2f   : > { %640 = vmatpush1.bf16.msra.mxu1 %v639_v59  ;;  %578 = vmatprep.subr.bf16.mxu0 %v577_v60  ;;  %v597_v57 = vpack.c.bf16 %v298_v52, %v294_v51  ;;  %v297_v59 = vld [vmem:[%s1124_s1 + $0x3e0] sm:$0xff]  ;;  %v661_v60 = vpack.c.bf16 %v300_v54, %v296_v53  ;;  %v295_v61 = vld [vmem:[%s1124_s1 + $0x3d0] sm:$0xff] }
  0x30   : > { %642 = vmatprep.subr.bf16.mxu1 %v641_v0  ;;  %v299_v62 = vld [vmem:[%s1124_s1 + $0x3f0] sm:$0xff]  ;;  %v599_v63 = vpack.c.bf16 %v297_v59, %v293_v58  ;;  %v171_v1 = vld [vmem:[%s1001_s27] sm:$0xff] }
  0x31   : > { %v663_v0 = vpack.c.bf16 %v299_v62, %v295_v61  ;;  %v301_v5 = vld [vmem:[%s1125_s2] sm:$0xf] }
  0x32   : > { %580 = vmatpush1.bf16.msra.mxu0 %v579_v6  ;;  %v313_v6 = vsub.s32 2, %v304_v3  ;;  %v310_v11 = vrot.slane %v301_v5, %v309_v7 }
  0x33   : > { %644 = vmatpush1.bf16.msra.mxu1 %v643_v8  ;;  %582 = vmatprep.subr.bf16.mxu0 %v581_v9  ;;  %v317_v8 = vsub.s32 3, %v304_v3  ;;  %v306_v9 = vrot.slane %v301_v5, %v305_v4 }
  0x34   : > { %646 = vmatprep.subr.bf16.mxu1 %v645_v13  ;;  %v314_v10 = vrot.slane %v301_v5, %v313_v6 }
  0x35   : > { %v318_v12 = vrot.slane %v301_v5, %v317_v8 }
  0x36   : > { %584 = vmatpush1.bf16.msra.mxu0 %v583_v19 }
  0x37   : > { %648 = vmatpush1.bf16.msra.mxu1 %v647_v20  ;;  %586 = vmatprep.subr.bf16.mxu0 %v585_v21 }
  0x38   : > { %650 = vmatprep.subr.bf16.mxu1 %v649_v25 }
  0x3a   : > { %588 = vmatpush1.bf16.msra.mxu0 %v587_v31 }
  0x3b   : > { %652 = vmatpush1.bf16.msra.mxu1 %v651_v32  ;;  %590 = vmatprep.subr.bf16.mxu0 %v589_v33 }
  0x3c   : > { %654 = vmatprep.subr.bf16.mxu1 %v653_v37 }
  0x3e   : > { %592 = vmatpush1.bf16.msra.mxu0 %v591_v43 }
  0x3f   : > { %656 = vmatpush1.bf16.msra.mxu1 %v655_v44  ;;  %594 = vmatprep.subr.bf16.mxu0 %v593_v45 }
  0x40   : > { %658 = vmatprep.subr.bf16.mxu1 %v657_v49 }
  0x42   : > { %596 = vmatpush1.bf16.msra.mxu0 %v595_v55 }
  0x43   : > { %660 = vmatpush1.bf16.msra.mxu1 %v659_v56  ;;  %598 = vmatprep.subr.bf16.mxu0 %v597_v57 }
  0x44   : > { %662 = vmatprep.subr.bf16.mxu1 %v661_v60 }
  0x46   : > { %600 = vmatpush1.bf16.msra.mxu0 %v599_v63 }
  0x47   : > { %664 = vmatpush1.bf16.msra.mxu1 %v663_v0 }
  0x49   : > { %388 = vmatmul.mubr.f32.vlgmr.msra.gmra.mrb[0].mxu0 %v171_v1 }
  0x4a   : > { %459 = vmatmul.mubr.f32.vlgmr.msra.gmra.mrb[0].mxu1 %v171_v1 }
 0x11c   : > { %v389_v13 = vpop.f32.mrb[0].mxu0 }
 0x11d   : > { %v390_v14 = vadd.f32 %v389_v13, %v306_v9  ;;  %v460_v15 = vpop.f32.mrb[0].mxu1  ;;  %v391_v16 = vpop.f32.mrb[1].mxu0 }
 0x11e   : > { %v461_v17 = vadd.f32 %v460_v15, %v314_v10  ;;  %v392_v18 = vadd.f32 %v391_v16, %v310_v11  ;;  %v462_v19 = vpop.f32.mrb[1].mxu1 }
 0x11f   : > { %465 = vst [vmem:[%s170_s5] sm:$0xff] %v390_v14  ;;  %v463_v20 = vadd.f32 %v462_v19, %v318_v12 }
 0x120   : > { %467 = vst [vmem:[%s170_s5 + $0x10] sm:$0xff] %v461_v17  ;;  %466 = vst [vmem:[%s170_s5 + $0x8] sm:$0xff] %v392_v18 }
 0x121   : > { %468 = vst [vmem:[%s170_s5 + $0x18] sm:$0xff] %v463_v20 }
 0x122 PF: > { %s13_s12 = sadd.s32 1, %s679_s12  }
 0x123   : > { %p10_p4 = scmp.ge.s32.totalorder %s13_s12, 4  }
 0x125   :  { %12 = sbr.rel (!%p10_p4) target bundleno = 1 (0x1), region = 62 }

// kernel: tcn_gcn_forward.3
= control target key start
LH: loop header
LB: loop body
LE: loop exit
PB: predicated region body
PF: predicated region fallthrough
CT: control target
= control target key end

     0   :  { %s6003_s0 = inlined_call_operand.vmem [shape: f32[2,8,16,32], index: 0, kind: input, shape index: {}]   ;;  %s6004_s1 = inlined_call_operand.vmem [shape: f32[2,8,16,16], index: 1, kind: input, shape index: {}]   ;;  %s6005_s2 = inlined_call_operand.vmem [shape: f32[32,2], index: 2, kind: input, shape index: {}]   ;;  %s6006_s3 = inlined_call_operand.vmem [shape: f32[2,32], index: 3, kind: input, shape index: {}]   ;;  %s6007_s4 = inlined_call_operand.vmem [shape: f32[16,112], index: 4, kind: input, shape index: {}]   ;;  %s6008_s5 = inlined_call_operand.vmem [shape: f32[16,112], index: 5, kind: input, shape index: {}]   ;;  %s6009_s6 = inlined_call_operand.vmem [shape: f32[1,32], index: 6, kind: input, shape index: {}]   ;;  %s6010_s7 = inlined_call_operand.vmem [shape: f32[1,32], index: 7, kind: input, shape index: {}]   ;;  %s6011_s8 = inlined_call_operand.vmem [shape: f32[16,32], index: 8, kind: input, shape index: {}]   ;;  %s6012_s9 = inlined_call_operand.vmem [shape: f32[1,32], index: 9, kind: input, shape index: {}]   ;;  %s6013_s10 = inlined_call_operand.vmem [shape: f32[288,32], index: 10, kind: input, shape index: {}]   ;;  %s6014_s11 = inlined_call_operand.vmem [shape: f32[1,32], index: 11, kind: input, shape index: {}]   ;;  %s6015_s12 = inlined_call_operand.vmem [shape: f32[16,32], index: 12, kind: input, shape index: {}]   ;;  %s6016_s13 = inlined_call_operand.vmem [shape: f32[1,32], index: 13, kind: input, shape index: {}]   ;;  %s6017_s14 = inlined_call_operand.<no memory space> [shape: f32[1], index: 14, kind: input, shape index: {}]   ;;  %s6018_s15 = inlined_call_operand.hbm [shape: f32[2,128,32], index: 15, kind: output, shape index: {}]  }
   0x1   :  { %6024 = sst [smem:[#allocation10_spill]] %s6003_s0 }
   0x2   :  { %6025 = sst [smem:[#allocation11_spill]] %s6004_s1 }
   0x3   :  { %20 = sst [smem:[#allocation2]] %s6017_s14 }
   0x4   :  { %21 = vsyncpa [#allocation4], 0 }
   0x5   :  { %23 = vsyncpa [#allocation4 + $0x1], 0  ;;  %s4798_s20 = smov 0   ;;  %s4800_s21 = smov 0  }
   0x6   :  { %s4802_s22 = smov 0   ;;  %s4804_s23 = smov 0  }
   0x7 LB: > { %s4819_s14 = sadd.s32 4294967295, %s4701_s23   ;;  %s3533_s24 = sadd.s32 4294967294, %s4701_s23   ;;  %s4701_s23 = sphi %s4804_s23, %s6042_s23   ;;  %s4697_s22 = sphi %s4802_s22, %s6041_s22   ;;  %s4693_s21 = sphi %s4800_s21, %s6040_s21   ;;  %s4689_s20 = sphi %s4798_s20, %s6039_s20  }
   0x8   : > { %s4823_s25 = sadd.s32 1, %s4701_s23   ;;  %s361_s26 = sadd.s32 1, %s4697_s22 }
   0x9   : > { %s358_s27 = ssub.s32 %s4701_s23, %s4823_s25  ;;  %p371_p0 = scmp.ne.s32.totalorder %s4697_s22, %s4693_s21 }
   0xa   : > { %p359_p1 = scmp.eq.s32.totalorder %s358_s27, 0  ;;  %p372_p2 = scmp.eq.s32.totalorder %s4819_s14, 1 }
   0xb   : > { %p377_p3 = scmp.ne.s32.totalorder %s4693_s21, %s4689_s20  ;;  %p378_p4 = scmp.eq.s32.totalorder %s3533_s24, 1 }
   0xc   : > { %s4834_s28 = scalar_select %p359_p1, %s4697_s22, %s361_s26  }
   0xd   : > { %p4836_p5 = por %p372_p2, %p371_p0  ;;  %p4840_p6 = por %p378_p4, %p377_p3 }
   0xe   : > { %6026 = sst [smem:[#allocation6_spill]] %s4834_s28  ;;  %p3536_p7 = scmp.ge.s32.totalorder %s4701_s23, 1 }
   0xf   : > { %p451_p8 = scmp.lt.s32.totalorder %s4701_s23, 3 }
  0x11   : > { %p452_p9 = pnand %p3536_p7, %p451_p8 }
  0x13   : > { %455 = sbr.rel (%p452_p9) target bundleno = 1652 (0x674), region = 80 }
  0x1a   : > { %v570_v0 = vld [vmem:[%s6005_s2] sm:$0xff]  ;;  %v571_v1 = vld [vmem:[%s6005_s2 + $0x8] sm:$0xff]  ;;  %v572_v2 = vld [vmem:[%s6005_s2 + $0x10] sm:$0xff]  ;;  %v4703_v3 = vmov 0.0|0.0   ;;  %vm4704_vm0 = vmmov 0   ;;  %v6019_v6 = vmov 0.0  }
  0x1b   : > { %4305 = vmatprep.subr.bf16.mxu0 %v4703_v3  ;;  %v4306_v4 = vpack.c.bf16 %v571_v1, %v570_v0  ;;  %v573_v5 = vld [vmem:[%s6005_s2 + $0x18] sm:$0xff]  ;;  %3939 = vmatprep.mubr.msk.f32.mxu0 %vm4704_vm0, %v6019_v6  ;;  %p504_p10 = scmp.lt.s32.totalorder %s4819_s14, 1  ;;  %vm530_vm1 = vcmask 261120   ;;  %s6029_s0 = sld [smem:[#allocation10_spill]]  ;;  %v648_v62 = vld [vmem:[%s6006_s3] sm:$0x3] }
  0x1c   : > { %v4309_v7 = vpack.c.bf16 %v573_v5, %v572_v2  ;;  %vm653_vm2 = vcmask 1041408   ;;  %vm649_vm3 = vcmask 15360   ;;  %vm894_vm4 = vcmask 130112   ;;  %s6030_s1 = sld [smem:[#allocation11_spill]]  ;;  %s4709_s19 = smov 48  }
  0x1d   : > { %4307 = vmatpush3.bf16.msra.mxu0 %v4306_v4  ;;  %s4862_s16 = scalar_select %p504_p10, %s4819_s14, 1  ;;  %vm959_vm5 = vcmask 1044484   ;;  %vm961_vm6 = vcmask 1045509   ;;  %vm963_vm7 = vcmask 1046534   ;;  %vm965_vm8 = vcmask 1047559  }
  0x1e   : > { %4308 = vmatprep.subr.bf16.mxu0 %v4703_v3  ;;  %vm973_vm9 = vcmask 1042432   ;;  %vm1078_vm10 = vcmask 130048   ;;  %vm967_vm11 = vcmask 1041409   ;;  %vm969_vm12 = vcmask 1042434   ;;  %s4711_s24 = smov 32   ;;  %s1241_s26 = sld [smem:[#allocation2]] }
  0x1f   : > { %s3697_s17 = sshll.u32 %s4862_s16, 7  ;;  %vm1255_vm13 = vcmask 1045504   ;;  %vm1247_vm14 = vcmask 1046528   ;;  %vm1263_vm15 = vcmask 1044480   ;;  %s4707_s16 = smov 112  }
  0x21   : > { %s4870_s28 = scalar_lea.vmem %s6029_s0, %s3697_s17  ;;  %4310 = vmatpush3.bf16.msra.mxu0 %v4309_v7 }
  0x22   : > { %v4873_v8 = vld [vmem:[%s4870_s28] sm:$0xff]  ;;  %v4876_v9 = vld [vmem:[%s4870_s28 + $0x8] sm:$0xff]  ;;  %v4879_v10 = vld [vmem:[%s4870_s28 + $0x10] sm:$0xff]  ;;  %3942 = vmatprep.subr.mxu0 %v6019_v6  ;;  %s5180_s0 = scalar_lea.vmem %s6030_s1, %s3697_s17  ;;  %s4708_s17 = smov 80  }
  0x23   : > { %v4882_v11 = vld [vmem:[%s4870_s28 + $0x18] sm:$0xff]  ;;  %v531_v12 = vsel %vm530_vm1, %v4873_v8, 0.0  ;;  %v532_v13 = vsel %vm530_vm1, %v4876_v9, 0.0  ;;  %v534_v14 = vsel %vm530_vm1, %v4879_v10, 0.0  ;;  %v4892_v15 = vld [vmem:[%s4870_s28 + $0x20] sm:$0xff]  ;;  %v4897_v18 = vld [vmem:[%s4870_s28 + $0x28] sm:$0xff] }
  0x24   : > { %v533_v16 = vadd.f32 %v532_v13, %v531_v12  ;;  %v536_v17 = vsel %vm530_vm1, %v4882_v11, 0.0  ;;  %v538_v20 = vsel %vm530_vm1, %v4892_v15, 0.0  ;;  %v4902_v21 = vld [vmem:[%s4870_s28 + $0x30] sm:$0xff]  ;;  %v540_v23 = vsel %vm530_vm1, %v4897_v18, 0.0  ;;  %v4907_v24 = vld [vmem:[%s4870_s28 + $0x38] sm:$0xff]  ;;  %v4912_v27 = vld [vmem:[%s4870_s28 + $0x40] sm:$0xff] }
  0x25   : > { %v542_v26 = vsel %vm530_vm1, %v4902_v21, 0.0  ;;  %v544_v29 = vsel %vm530_vm1, %v4907_v24, 0.0  ;;  %v4917_v30 = vld [vmem:[%s4870_s28 + $0x48] sm:$0xff]  ;;  %v546_v32 = vsel %vm530_vm1, %v4912_v27, 0.0  ;;  %v4922_v33 = vld [vmem:[%s4870_s28 + $0x50] sm:$0xff]  ;;  %v4927_v36 = vld [vmem:[%s4870_s28 + $0x58] sm:$0xff]  ;;  %v734_v13 = vlaneseq }
  0x26   : > { %v535_v19 = vadd.f32 %v534_v14, %v533_v16  ;;  %v548_v35 = vsel %vm530_vm1, %v4917_v30, 0.0  ;;  %v550_v38 = vsel %vm530_vm1, %v4922_v33, 0.0  ;;  %v4932_v39 = vld [vmem:[%s4870_s28 + $0x60] sm:$0xff]  ;;  %v552_v41 = vsel %vm530_vm1, %v4927_v36, 0.0  ;;  %v4937_v42 = vld [vmem:[%s4870_s28 + $0x68] sm:$0xff]  ;;  %v4942_v45 = vld [vmem:[%s4870_s28 + $0x70] sm:$0xff] }
  0x27   : > { %v554_v44 = vsel %vm530_vm1, %v4932_v39, 0.0  ;;  %v556_v47 = vsel %vm530_vm1, %v4937_v42, 0.0  ;;  %v4947_v48 = vld [vmem:[%s4870_s28 + $0x78] sm:$0xff]  ;;  %v558_v50 = vsel %vm530_vm1, %v4942_v45, 0.0  ;;  %v4961_v14 = vshrl.u32 %v734_v13, 7  ;;  %s4710_s28 = smov 64  }
  0x28   : > { %v537_v22 = vadd.f32 %v536_v17, %v535_v19  ;;  %v560_v52 = vsel %vm530_vm1, %v4947_v48, 0.0 }
  0x29   : > { %v736_v16 = vsub.s32 0, %v4961_v14 }
  0x2a   : > { %v539_v25 = vadd.f32 %v538_v20, %v537_v22 }
  0x2c   : > { %v541_v28 = vadd.f32 %v540_v23, %v539_v25 }
  0x2e   : > { %v543_v31 = vadd.f32 %v542_v26, %v541_v28 }
  0x30   : > { %v545_v34 = vadd.f32 %v544_v29, %v543_v31 }
  0x32   : > { %v547_v37 = vadd.f32 %v546_v32, %v545_v34 }
  0x34   : > { %v549_v40 = vadd.f32 %v548_v35, %v547_v37 }
  0x36   : > { %v551_v43 = vadd.f32 %v550_v38, %v549_v40 }
  0x38   : > { %v553_v46 = vadd.f32 %v552_v41, %v551_v43 }
  0x3a   : > { %v555_v49 = vadd.f32 %v554_v44, %v553_v46 }
  0x3c   : > { %v557_v51 = vadd.f32 %v556_v47, %v555_v49 }
  0x3e   : > { %v559_v53 = vadd.f32 %v558_v50, %v557_v51 }
  0x40   : > { %v561_v54 = vadd.f32 %v560_v52, %v559_v53 }
  0x42   : > { %v562_v55 = vrot.slane %v561_v54, 4 }
  0x44   : > { %v563_v56 = vadd.f32 %v562_v55, %v561_v54  ;;  %v1076_v54 = vld [vmem:[%s6008_s5] sm:$0xff]  ;;  %v1077_v55 = vld [vmem:[%s6008_s5 + $0x8] sm:$0xff] }
  0x46   : > { %v564_v57 = vrot.slane %v563_v56, 2 }
  0x48   : > { %v565_v58 = vadd.f32 %v564_v57, %v563_v56  ;;  %v4311_v56 = vpack.c.bf16 %v1077_v55, %v1076_v54 }
  0x4a   : > { %v566_v59 = vrot.slane %v565_v58, 1  ;;  %4312 = vmatprep.subr.bf16.mxu1 %v4311_v56 }
  0x4b   : > { %4314 = vmatpush3.bf16.msra.mxu1 %v4311_v56 }
  0x4c   : > { %v567_v60 = vadd.f32 %v566_v59, %v565_v58 }
  0x4e   : > { %v569_v61 = vmul.f32 0.0078125, %v567_v60 }
  0x50   : > { %3940 = vmatmul.mubr.msk.f32.vlgmr.msra.gmra.mrb[0].mxu0 %vm530_vm1, %v569_v61 }
  0x51   : > { %3943 = vmatpush3.msk.msra.mxu0 %vm653_vm2, %v648_v62  ;;  %3944 = vmatprep.mubr.msk.f32.mxu0 %vm4704_vm0, %v6019_v6  ;;  %vm1271_vm0 = vcmask 1043456  }
 0x123   : > { %v643_v63 = vpop.f32.mrb[0].mxu0 }
 0x124   : > { %v647_v0 = vmax.f32 %v643_v63, 0.0  ;;  %v3941_v1 = vpop.f32.mrb[1].mxu0 }
 0x125   : > { %v1074_v1 = vld [vmem:[%s6007_s4] sm:$0xff] }
 0x126   : > { %3945 = vmatmul.mubr.msk.f32.vlgmr.msra.gmra.mrb[2].mxu0 %vm649_vm3, %v647_v0 }
 0x1f9   : > { %v723_v2 = vpop.f32.mrb[2].mxu0 }
 0x1fa   : > { %v3545_v3 = vmul.f32 -2.0, %v723_v2  ;;  %v3946_v4 = vpop.f32.mrb[3].mxu0  ;;  %v1075_v2 = vld [vmem:[%s6007_s4 + $0x8] sm:$0xff] }
 0x1fb   : > { %v884_v4 = vand.u32 127, %v734_v13 }
 0x1fc   : > { %v729_v5 = vmul.f32 1.442695, %v3545_v3  ;;  %v5090_v3 = vpack.c.bf16 %v1075_v2, %v1074_v1 }
 0x1fe   : > { %4631 = vpow2.f32 %v729_v5  ;;  %4316 = vmatprep.subr.bf16.mxu1 %v5090_v3 }
 0x208   : > { %v4632_v7 = vpop.eup %4631 }
 0x209   : > { %v731_v12 = vadd.f32 1.0, %v4632_v7 }
 0x20b   : > { %4633 = vrcp.f32 %v731_v12  ;;  %v889_v12 = vadd.s32 4294967288, %v884_v4 }
 0x215   : > { %v4634_v17 = vpop.eup %4633 }
 0x216   : > { %v737_v19 = vrot.slane %v4634_v17, %v736_v16 }
 0x218   : > { %v4967_v20 = vmul.f32 %v737_v19, %v4879_v10  ;;  %v4970_v22 = vmul.f32 %v737_v19, %v4873_v8  ;;  %v4977_v26 = vmul.f32 %v737_v19, %v4882_v11  ;;  %v4980_v28 = vmul.f32 %v737_v19, %v4876_v9 }
 0x219   : > { %v4987_v29 = vmul.f32 %v737_v19, %v4897_v18  ;;  %v4990_v31 = vmul.f32 %v737_v19, %v4892_v15  ;;  %v4997_v32 = vmul.f32 %v737_v19, %v4907_v24  ;;  %v5000_v34 = vmul.f32 %v737_v19, %v4902_v21 }
 0x21a   : > { %v825_v23 = vsel %vm530_vm1, %v4967_v20, -inf  ;;  %v819_v25 = vsel %vm530_vm1, %v4970_v22, -inf  ;;  %v828_v10 = vsel %vm530_vm1, %v4977_v26, -inf  ;;  %v822_v8 = vsel %vm530_vm1, %v4980_v28, -inf }
 0x21b   : > { %826 = vmax.xlane.f32.xlu1 %v825_v23  ;;  %820 = vmax.xlane.f32.xlu0 %v819_v25  ;;  %v834_v9 = vsel %vm530_vm1, %v4987_v29, -inf  ;;  %v831_v11 = vsel %vm530_vm1, %v4990_v31, -inf  ;;  %v840_v15 = vsel %vm530_vm1, %v4997_v32, -inf  ;;  %v837_v18 = vsel %vm530_vm1, %v5000_v34, -inf }
 0x21c   : > { %v5007_v35 = vmul.f32 %v737_v19, %v4917_v30  ;;  %v5010_v37 = vmul.f32 %v737_v19, %v4912_v27  ;;  %v5017_v38 = vmul.f32 %v737_v19, %v4927_v36  ;;  %v5020_v40 = vmul.f32 %v737_v19, %v4922_v33 }
 0x21d   : > { %v5027_v41 = vmul.f32 %v737_v19, %v4937_v42  ;;  %v5030_v43 = vmul.f32 %v737_v19, %v4932_v39  ;;  %v5037_v44 = vmul.f32 %v737_v19, %v4947_v48  ;;  %v5040_v46 = vmul.f32 %v737_v19, %v4942_v45 }
 0x21e   : > { %v846_v21 = vsel %vm530_vm1, %v5007_v35, -inf  ;;  %v843_v24 = vsel %vm530_vm1, %v5010_v37, -inf  ;;  %v852_v27 = vsel %vm530_vm1, %v5017_v38, -inf  ;;  %v849_v30 = vsel %vm530_vm1, %v5020_v40, -inf }
 0x21f   : > { %829 = vmax.xlane.f32.xlu1 %v828_v10  ;;  %823 = vmax.xlane.f32.xlu0 %v822_v8  ;;  %v858_v33 = vsel %vm530_vm1, %v5027_v41, -inf  ;;  %v855_v36 = vsel %vm530_vm1, %v5030_v43, -inf  ;;  %v864_v39 = vsel %vm530_vm1, %v5037_v44, -inf  ;;  %v861_v42 = vsel %vm530_vm1, %v5040_v46, -inf }
 0x220   : > { %v757_v47 = vsel %vm530_vm1, %v4980_v28, 0.0  ;;  %v754_v48 = vsel %vm530_vm1, %v4970_v22, 0.0  ;;  %v763_v45 = vsel %vm530_vm1, %v4977_v26, 0.0  ;;  %v760_v49 = vsel %vm530_vm1, %v4967_v20, 0.0 }
 0x221   : > { %v769_v50 = vsel %vm530_vm1, %v4987_v29, 0.0  ;;  %v766_v51 = vsel %vm530_vm1, %v4990_v31, 0.0  ;;  %v775_v52 = vsel %vm530_vm1, %v4997_v32, 0.0  ;;  %v772_v53 = vsel %vm530_vm1, %v5000_v34, 0.0 }
 0x222   : > { %v781_v57 = vsel %vm530_vm1, %v5007_v35, 0.0  ;;  %v778_v58 = vsel %vm530_vm1, %v5010_v37, 0.0  ;;  %v787_v59 = vsel %vm530_vm1, %v5017_v38, 0.0  ;;  %v784_v60 = vsel %vm530_vm1, %v5020_v40, 0.0 }
 0x223   : > { %835 = vmax.xlane.f32.xlu1 %v834_v9  ;;  %832 = vmax.xlane.f32.xlu0 %v831_v11  ;;  %v793_v61 = vsel %vm530_vm1, %v5027_v41, 0.0  ;;  %v790_v62 = vsel %vm530_vm1, %v5030_v43, 0.0  ;;  %v799_v63 = vsel %vm530_vm1, %v5037_v44, 0.0  ;;  %v796_v0 = vsel %vm530_vm1, %v5040_v46, 0.0 }
 0x224   : > { %v5095_v23 = vsub.s32 %v889_v12, %v4961_v14  ;;  %v5098_v25 = vsub.s32 %v884_v4, %v4961_v14 }
 0x227   : > { %841 = vmax.xlane.f32.xlu1 %v840_v15  ;;  %838 = vmax.xlane.f32.xlu0 %v837_v18 }
 0x22b   : > { %847 = vmax.xlane.f32.xlu1 %v846_v21  ;;  %844 = vmax.xlane.f32.xlu0 %v843_v24 }
 0x22f   : > { %853 = vmax.xlane.f32.xlu1 %v852_v27  ;;  %850 = vmax.xlane.f32.xlu0 %v849_v30 }
 0x233   : > { %859 = vmax.xlane.f32.xlu1 %v858_v33  ;;  %856 = vmax.xlane.f32.xlu0 %v855_v36 }
 0x237   : > { %865 = vmax.xlane.f32.xlu1 %v864_v39  ;;  %862 = vmax.xlane.f32.xlu0 %v861_v42 }
 0x23b   : > { %758 = vadd.xlane.f32.xlu1 %v757_v47  ;;  %755 = vadd.xlane.f32.xlu0 %v754_v48 }
 0x23f   : > { %764 = vadd.xlane.f32.xlu1 %v763_v45  ;;  %761 = vadd.xlane.f32.xlu0 %v760_v49 }
 0x243   : > { %770 = vadd.xlane.f32.xlu1 %v769_v50  ;;  %767 = vadd.xlane.f32.xlu0 %v766_v51 }
 0x247   : > { %776 = vadd.xlane.f32.xlu1 %v775_v52  ;;  %773 = vadd.xlane.f32.xlu0 %v772_v53 }
 0x24b   : > { %782 = vadd.xlane.f32.xlu1 %v781_v57  ;;  %779 = vadd.xlane.f32.xlu0 %v778_v58 }
 0x24f   : > { %788 = vadd.xlane.f32.xlu1 %v787_v59  ;;  %785 = vadd.xlane.f32.xlu0 %v784_v60 }
 0x253   : > { %794 = vadd.xlane.f32.xlu1 %v793_v61  ;;  %791 = vadd.xlane.f32.xlu0 %v790_v62 }
 0x257   : > { %800 = vadd.xlane.f32.xlu1 %v799_v63  ;;  %797 = vadd.xlane.f32.xlu0 %v796_v0 }
 0x2a8   : > { %v827_v5 = vpop.xlane.xlu1 %826  ;;  %v821_v7 = vpop.xlane.xlu0 %820 }
 0x2a9   : > { %v1004_v18 = vrot.slane %v827_v5, %v5098_v25  ;;  %v995_v21 = vrot.slane %v821_v7, %v5098_v25 }
 0x2ac   : > { %v830_v17 = vpop.xlane.xlu1 %829  ;;  %v824_v19 = vpop.xlane.xlu0 %823 }
 0x2ad   : > { %v1008_v9 = vrot.slane %v830_v17, %v5095_v23  ;;  %v999_v11 = vrot.slane %v824_v19, %v5095_v23 }
 0x2af   : > { %v1009_v36 = vsel %vm894_vm4, %v1008_v9, %v1004_v18  ;;  %v1000_v39 = vsel %vm894_vm4, %v999_v11, %v995_v21 }
 0x2b0   : > { %v836_v10 = vpop.xlane.xlu1 %835  ;;  %v833_v8 = vpop.xlane.xlu0 %832  ;;  %v1064_v49 = vsel %vm959_vm5, %v1009_v36, %v1000_v39 }
 0x2b1   : > { %v1017_v13 = vrot.slane %v836_v10, %v5095_v23  ;;  %v1013_v15 = vrot.slane %v833_v8, %v5098_v25 }
 0x2b3   : > { %v1018_v42 = vsel %vm894_vm4, %v1017_v13, %v1013_v15 }
 0x2b4   : > { %v842_v24 = vpop.xlane.xlu1 %841  ;;  %v839_v27 = vpop.xlane.xlu0 %838  ;;  %v1065_v52 = vsel %vm961_vm6, %v1018_v42, %v1064_v49 }
 0x2b5   : > { %v1026_v30 = vrot.slane %v842_v24, %v5095_v23  ;;  %v1022_v33 = vrot.slane %v839_v27, %v5098_v25 }
 0x2b7   : > { %v1027_v47 = vsel %vm894_vm4, %v1026_v30, %v1022_v33 }
 0x2b8   : > { %v848_v48 = vpop.xlane.xlu1 %847  ;;  %v845_v45 = vpop.xlane.xlu0 %844  ;;  %v1066_v54 = vsel %vm963_vm7, %v1027_v47, %v1065_v52 }
 0x2b9   : > { %v1035_v50 = vrot.slane %v848_v48, %v5095_v23  ;;  %v1031_v51 = vrot.slane %v845_v45, %v5098_v25 }
 0x2bb   : > { %v1036_v53 = vsel %vm894_vm4, %v1035_v50, %v1031_v51 }
 0x2bc   : > { %v854_v55 = vpop.xlane.xlu1 %853  ;;  %v851_v56 = vpop.xlane.xlu0 %850  ;;  %v1067_v57 = vsel %vm965_vm8, %v1036_v53, %v1066_v54 }
 0x2bd   : > { %v1072_v58 = vsel %vm973_vm9, 0.0, %v1067_v57  ;;  %v1044_v63 = vrot.slane %v854_v55, %v5095_v23  ;;  %v1040_v0 = vrot.slane %v851_v56, %v5098_v25 }
 0x2be   : > { %3951 = vmatprep.mubr.msk.f32.mxu1 %vm1078_vm10, %v1072_v58 }
 0x2bf   : > { %v1045_v12 = vsel %vm894_vm4, %v1044_v63, %v1040_v0 }
 0x2c0   : > { %v860_v59 = vpop.xlane.xlu1 %859  ;;  %v857_v60 = vpop.xlane.xlu0 %856 }
 0x2c1   : > { %v1053_v61 = vrot.slane %v860_v59, %v5095_v23  ;;  %v1049_v62 = vrot.slane %v857_v60, %v5098_v25 }
 0x2c3   : > { %v1054_v1 = vsel %vm894_vm4, %v1053_v61, %v1049_v62 }
 0x2c4   : > { %v866_v2 = vpop.xlane.xlu1 %865  ;;  %v863_v4 = vpop.xlane.xlu0 %862  ;;  %v1068_v19 = vsel %vm967_vm11, %v1054_v1, %v1045_v12 }
 0x2c5   : > { %v1062_v5 = vrot.slane %v866_v2, %v5095_v23  ;;  %v1058_v7 = vrot.slane %v863_v4, %v5098_v25 }
 0x2c7   : > { %v1063_v17 = vsel %vm894_vm4, %v1062_v5, %v1058_v7 }
 0x2c8   : > { %v759_v10 = vpop.xlane.xlu1 %758  ;;  %v756_v8 = vpop.xlane.xlu0 %755  ;;  %v1069_v9 = vsel %vm969_vm12, %v1063_v17, %v1068_v19 }
 0x2c9   : > { %v1073_v11 = vsel %vm973_vm9, %v1069_v9, 0.0  ;;  %v804_v36 = vmul.f32 0.03125, %v759_v10  ;;  %v803_v39 = vmul.f32 0.03125, %v756_v8 }
 0x2ca   : > { %3952 = vmatmul.mubr.msk.f32.vlgmr.msra.gmra.mrb[0].mxu1 %vm1078_vm10, %v1073_v11 }
 0x2cb   : > { %4318 = vmatpush3.bf16.msra.mxu1 %v5090_v3  ;;  %v893_v52 = vrot.slane %v804_v36, %v5095_v23  ;;  %v888_v53 = vrot.slane %v803_v39, %v5098_v25 }
 0x2cc   : > { %v765_v13 = vpop.xlane.xlu1 %764  ;;  %v762_v15 = vpop.xlane.xlu0 %761 }
 0x2cd   : > { %v806_v18 = vmul.f32 0.03125, %v765_v13  ;;  %v805_v21 = vmul.f32 0.03125, %v762_v15  ;;  %v895_v62 = vsel %vm894_vm4, %v893_v52, %v888_v53  ;;  %v1419_v53 = vld [vmem:[%s6011_s8] sm:$0xff] }
 0x2cf   : > { %v903_v42 = vrot.slane %v806_v18, %v5095_v23  ;;  %v899_v47 = vrot.slane %v805_v21, %v5098_v25 }
 0x2d0   : > { %v771_v24 = vpop.xlane.xlu1 %770  ;;  %v768_v27 = vpop.xlane.xlu0 %767 }
 0x2d1   : > { %v808_v30 = vmul.f32 0.03125, %v771_v24  ;;  %v807_v33 = vmul.f32 0.03125, %v768_v27  ;;  %v904_v56 = vsel %vm894_vm4, %v903_v42, %v899_v47 }
 0x2d2   : > { %v960_v0 = vsel %vm959_vm5, %v904_v56, %v895_v62  ;;  %v5191_v56 = vld [vmem:[%s5180_s0 + $0x10] sm:$0xff]  ;;  %v5221_v62 = vld [vmem:[%s5180_s0 + $0x40] sm:$0xff] }
 0x2d3   : > { %v912_v49 = vrot.slane %v808_v30, %v5095_v23  ;;  %v908_v3 = vrot.slane %v807_v33, %v5098_v25 }
 0x2d4   : > { %v777_v48 = vpop.xlane.xlu1 %776  ;;  %v774_v45 = vpop.xlane.xlu0 %773 }
 0x2d5   : > { %v810_v50 = vmul.f32 0.03125, %v777_v48  ;;  %v809_v51 = vmul.f32 0.03125, %v774_v45  ;;  %v913_v59 = vsel %vm894_vm4, %v912_v49, %v908_v3 }
 0x2d6   : > { %v962_v7 = vsel %vm961_vm6, %v913_v59, %v960_v0  ;;  %v5208_v59 = vld [vmem:[%s5180_s0 + $0x28] sm:$0xff]  ;;  %v5231_v0 = vld [vmem:[%s5180_s0 + $0x50] sm:$0xff] }
 0x2d7   : > { %v921_v54 = vrot.slane %v810_v50, %v5095_v23  ;;  %v917_v55 = vrot.slane %v809_v51, %v5098_v25 }
 0x2d8   : > { %v783_v57 = vpop.xlane.xlu1 %782  ;;  %v780_v58 = vpop.xlane.xlu0 %779 }
 0x2d9   : > { %v812_v60 = vmul.f32 0.03125, %v783_v57  ;;  %v811_v61 = vmul.f32 0.03125, %v780_v58  ;;  %v922_v63 = vsel %vm894_vm4, %v921_v54, %v917_v55  ;;  %v5183_v54 = vld [vmem:[%s5180_s0] sm:$0xff]  ;;  %v5188_v55 = vld [vmem:[%s5180_s0 + $0x8] sm:$0xff]  ;;  %v5198_v57 = vld [vmem:[%s5180_s0 + $0x18] sm:$0xff] }
 0x2da   : > { %v964_v17 = vsel %vm963_vm7, %v922_v63, %v962_v7  ;;  %3965 = vmatprep.mubr.msk.f32.mxu0 %vm1078_vm10, %v5183_v54  ;;  %v5201_v58 = vld [vmem:[%s5180_s0 + $0x20] sm:$0xff]  ;;  %v5228_v63 = vld [vmem:[%s5180_s0 + $0x48] sm:$0xff]  ;;  %v5258_v7 = vld [vmem:[%s5180_s0 + $0x78] sm:$0xff] }
 0x2db   : > { %v930_v1 = vrot.slane %v812_v60, %v5095_v23  ;;  %v926_v2 = vrot.slane %v811_v61, %v5098_v25  ;;  %v5211_v60 = vld [vmem:[%s5180_s0 + $0x30] sm:$0xff]  ;;  %v5218_v61 = vld [vmem:[%s5180_s0 + $0x38] sm:$0xff]  ;;  %6033 = vst [vmem:[#allocation9_spill] sm:$0xff] %v5258_v7 }
 0x2dc   : > { %v789_v4 = vpop.xlane.xlu1 %788  ;;  %v786_v5 = vpop.xlane.xlu0 %785 }
 0x2dd   : > { %v931_v12 = vsel %vm894_vm4, %v930_v1, %v926_v2  ;;  %v814_v8 = vmul.f32 0.03125, %v789_v4  ;;  %v813_v9 = vmul.f32 0.03125, %v786_v5  ;;  %v5238_v1 = vld [vmem:[%s5180_s0 + $0x58] sm:$0xff]  ;;  %v5241_v2 = vld [vmem:[%s5180_s0 + $0x60] sm:$0xff]  ;;  %v5248_v4 = vld [vmem:[%s5180_s0 + $0x68] sm:$0xff] }
 0x2de   : > { %v966_v19 = vsel %vm965_vm8, %v931_v12, %v964_v17  ;;  %6031 = vst [vmem:[#allocation7_spill] sm:$0xff] %v5248_v4  ;;  %v5251_v5 = vld [vmem:[%s5180_s0 + $0x70] sm:$0xff]  ;;  %s4706_s0 = smov 96  }
 0x2df   : > { %v974_v10 = vsel %vm973_vm9, 0.0, %v966_v19  ;;  %v939_v27 = vrot.slane %v814_v8, %v5095_v23  ;;  %v935_v30 = vrot.slane %v813_v9, %v5098_v25  ;;  %6032 = vst [vmem:[#allocation8_spill] sm:$0xff] %v5251_v5 }
 0x2e0   : > { %v795_v11 = vpop.xlane.xlu1 %794  ;;  %3958 = vmatprep.mubr.msk.f32.mxu1 %vm1078_vm10, %v974_v10  ;;  %v792_v13 = vpop.xlane.xlu0 %791 }
 0x2e1   : > { %v816_v15 = vmul.f32 0.03125, %v795_v11  ;;  %v815_v18 = vmul.f32 0.03125, %v792_v13  ;;  %v940_v49 = vsel %vm894_vm4, %v939_v27, %v935_v30 }
 0x2e3   : > { %v948_v21 = vrot.slane %v816_v15, %v5095_v23  ;;  %v944_v24 = vrot.slane %v815_v18, %v5098_v25 }
 0x2e4   : > { %v801_v33 = vpop.xlane.xlu1 %800  ;;  %v798_v36 = vpop.xlane.xlu0 %797 }
 0x2e5   : > { %v818_v39 = vmul.f32 0.03125, %v801_v33  ;;  %v817_v42 = vmul.f32 0.03125, %v798_v36  ;;  %v949_v47 = vsel %vm894_vm4, %v948_v21, %v944_v24 }
 0x2e6   : > { %v968_v50 = vsel %vm967_vm11, %v949_v47, %v940_v49 }
 0x2e7   : > { %v957_v48 = vrot.slane %v818_v39, %v5095_v23  ;;  %v953_v45 = vrot.slane %v817_v42, %v5098_v25  ;;  %v1420_v23 = vld [vmem:[%s6011_s8 + $0x8] sm:$0xff] }
 0x2e8   : > { %v4319_v25 = vpack.c.bf16 %v1420_v23, %v1419_v53 }
 0x2e9   : > { %v958_v3 = vsel %vm894_vm4, %v957_v48, %v953_v45 }
 0x2ea   : > { %v970_v51 = vsel %vm969_vm12, %v958_v3, %v968_v50  ;;  %4320 = vmatprep.subr.bf16.mxu0 %v4319_v25 }
 0x2eb   : > { %v975_v52 = vsel %vm973_vm9, %v970_v51, 0.0  ;;  %4322 = vmatpush3.bf16.msra.mxu0 %v4319_v25  ;;  %v1242_v51 = vstv %s1241_s26  ;;  %s3699_s26 = sshll.u32 %s4819_s14, 11 }
 0x2ec   : > { %3959 = vmatmul.mubr.msk.f32.vlgmr.msra.gmra.mrb[0].mxu1 %vm1078_vm10, %v975_v52 }
 0x2ee   : > { %3966 = vmatmul.mubr.msk.f32.vlgmr.msra.gmra.mrb[4].mxu0 %vm1078_vm10, %v5188_v55 }
 0x2ef   : > { %3968 = vmatprep.mubr.msk.f32.mxu0 %vm1078_vm10, %v5191_v56 }
 0x2f2   : > { %3969 = vmatmul.mubr.msk.f32.gmra.mrb[6].mxu0 %vm1078_vm10, %v5198_v57 }
 0x2f3   : > { %3971 = vmatprep.mubr.msk.f32.mxu0 %vm1078_vm10, %v5201_v58 }
 0x2f6   : > { %3972 = vmatmul.mubr.msk.f32.gmra.mrb[8].mxu0 %vm1078_vm10, %v5208_v59 }
 0x2f7   : > { %3974 = vmatprep.mubr.msk.f32.mxu0 %vm1078_vm10, %v5211_v60 }
 0x2fa   : > { %3975 = vmatmul.mubr.msk.f32.gmra.mrb[10].mxu0 %vm1078_vm10, %v5218_v61 }
 0x2fb   : > { %3977 = vmatprep.mubr.msk.f32.mxu0 %vm1078_vm10, %v5221_v62 }
 0x2fe   : > { %3978 = vmatmul.mubr.msk.f32.gmra.mrb[12].mxu0 %vm1078_vm10, %v5228_v63 }
 0x2ff   : > { %3980 = vmatprep.mubr.msk.f32.mxu0 %vm1078_vm10, %v5231_v0 }
 0x302   : > { %3981 = vmatmul.mubr.msk.f32.gmra.mrb[14].mxu0 %vm1078_vm10, %v5238_v1 }
 0x303   : > { %3983 = vmatprep.mubr.msk.f32.mxu0 %vm1078_vm10, %v5241_v2 }
 0x306   : > { %3984 = vmatmul.mubr.msk.f32.gmra.mrb[16].mxu0 %vm1078_vm10, %v5248_v4 }
 0x307   : > { %3986 = vmatprep.mubr.msk.f32.mxu0 %vm1078_vm10, %v5251_v5 }
 0x30a   : > { %3987 = vmatmul.mubr.msk.f32.gmra.mrb[18].mxu0 %vm1078_vm10, %v5258_v7 }
 0x30b   : > { %3997 = vmatprep.mubr.f32.mxu0 %v6019_v6 }
 0x3bf   : > { %v3960_v12 = vpop.f32.mrb[0].mxu1 }
 0x3c0   : > { %v1232_v17 = vpop.f32.mrb[1].mxu1  ;;  %v1257_v19 = vrot.slane %v3960_v12, 2  ;;  %v1249_v10 = vrot.slane %v3960_v12, 1  ;;  %v1265_v8 = vrot.slane %v3960_v12, 3  ;;  %v1280_v9 = vrot.slane %v3960_v12, 5 }
 0x3c1   : > { %v1256_v11 = vrot.slane %v1232_v17, 2  ;;  %v1248_v13 = vrot.slane %v1232_v17, 1  ;;  %v1264_v15 = vrot.slane %v1232_v17, 3  ;;  %v1279_v18 = vrot.slane %v1232_v17, 5  ;;  %v5269_v45 = vpop.f32.mrb[4].mxu0 }
 0x3c2   : > { %v1272_v21 = vrot.slane %v1232_v17, 4  ;;  %v1273_v24 = vrot.slane %v3960_v12, 4  ;;  %v1286_v27 = vrot.slane %v1232_v17, 6  ;;  %v1287_v30 = vrot.slane %v3960_v12, 6  ;;  %v5271_v49 = vpop.f32.mrb[5].mxu0 }
 0x3c3   : > { %v1258_v33 = vsel %vm1255_vm13, %v1256_v11, %v1257_v19  ;;  %v1250_v36 = vsel %vm1247_vm14, %v1248_v13, %v1249_v10  ;;  %v1266_v39 = vsel %vm1263_vm15, %v1264_v15, %v1265_v8  ;;  %v1281_v42 = vsel %vm973_vm9, %v1279_v18, %v1280_v9 }
 0x3c4   : > { %1259 = vrot.lane.b32.xlu1 %v1258_v33, %s4706_s0  ;;  %1251 = vrot.lane.b32.xlu0 %v1250_v36, %s4707_s16  ;;  %v1274_v47 = vsel %vm1271_vm0, %v1272_v21, %v1273_v24  ;;  %v1288_v48 = vsel %vm653_vm2, %v1286_v27, %v1287_v30  ;;  %v1244_v23 = vadd.f32 %v1242_v51, %v1232_v17  ;;  %v1716_v51 = vld [vmem:[%s6013_s10 + $0x88] sm:$0xff]  ;;  %s501_s16 = sand.u32 1, %s4693_s21  }
 0x3c5   : > { %v5273_v3 = vpop.f32.mrb[6].mxu0  ;;  %s5962_s14 = scalar_lea.sflag [#allocation4], %s501_s16 }
 0x3c6   : > { %v5275_v50 = vpop.f32.mrb[7].mxu0 }
 0x3c8   : > { %1267 = vrot.lane.b32.xlu1 %v1266_v39, %s4708_s17  ;;  %1282 = vrot.lane.b32.xlu0 %v1281_v42, %s4709_s19  ;;  %v1345_v42 = vsub.s32 4, %v4961_v14  ;;  %s3537_s17 = sshll.u32 %s501_s16, 7 }
 0x3c9   : > { %v5277_v52 = vpop.f32.mrb[8].mxu0 }
 0x3ca   : > { %v5279_v53 = vpop.f32.mrb[9].mxu0 }
 0x3cc   : > { %1275 = vrot.lane.b32.xlu1 %v1274_v47, %s4710_s28  ;;  %s4712_s28 = smov [#allocation3]  }
 0x3cd   : > { %v5281_v10 = vpop.f32.mrb[10].mxu0 }
 0x3ce   : > { %v5283_v8 = vpop.f32.mrb[11].mxu0 }
 0x3d0   : > { %1289 = vrot.lane.b32.xlu1 %v1288_v48, %s4711_s24  ;;  %v1715_v48 = vld [vmem:[%s6013_s10 + $0x80] sm:$0xff]  ;;  %s5890_s24 = scalar_lea.vmem [#allocation3], %s3537_s17  ;;  %s5952_s17 = scalar_lea.hbm %s6018_s15, %s3699_s26 }
 0x3d1   : > { %v5285_v39 = vpop.f32.mrb[12].mxu0  ;;  %s3459_s27 = sshll.u32 %s5890_s24, 4  ;;  %s4643_s26 = sshll.u32 %s4712_s28, 4  ;;  %s5954_s27 = int_to_ptr.vmem [resolvable:$true] %s3459_s27  ;;  %s4644_s26 = int_to_ptr.vmem [resolvable:$false] %s4643_s26 }
 0x3d2   : > { %v5288_v47 = vpop.f32.mrb[13].mxu0  ;;  %s4639_s19 = scalar_lea.vmem %s5954_s27, 2048  ;;  %s4645_s18 = scalar_lea.vmem %s4644_s26, 4096 }
 0x3d3   : > { %p4640_p11 = scmp.ne.s32.totalorder %s5954_s27, %s4639_s19  ;;  %p4646_p0 = scmp.lt.s32.totalorder %s5954_s27, %s4644_s26 }
 0x3d4   : > { %p4647_p1 = scmp.lt.s32.totalorder %s4645_s18, %s4639_s19 }
 0x3d5   : > { %p4641_p12 = pnand %p4640_p11, %p4836_p5 }
 0x3d6   : > { %p4648_p2 = por %p4647_p1, %p4646_p0 }
 0x3d7   : > { %p4642_p13 = pneg %p4641_p12 }
 0x3d9   : > { %p4649_p3 = pnand %p4648_p2, %p4642_p13 }
 0x436   : > { %v1260_v25 = vpop.permute.xlu1 %1259  ;;  %v1252_v12 = vpop.permute.xlu0 %1251 }
 0x437   : > { %v1254_v19 = vadd.f32 %v1252_v12, %v1244_v23  ;;  %v5296_v23 = vpack.c.bf16 %v1716_v51, %v1715_v48  ;;  %v1720_v48 = vld [vmem:[%s6013_s10 + $0xa8] sm:$0xff] }
 0x439   : > { %v1262_v9 = vadd.f32 %v1260_v25, %v1254_v19  ;;  %v5298_v25 = vpop.f32.mrb[14].mxu0  ;;  %4399 = vmatprep.subr.bf16.mxu1 %v5296_v23 }
 0x43a   : > { %v1268_v11 = vpop.permute.xlu1 %1267  ;;  %v1283_v21 = vpop.permute.xlu0 %1282  ;;  %4401 = vmatpush3.bf16.msra.mxu1 %v5296_v23 }
 0x43b   : > { %v1270_v13 = vadd.f32 %v1268_v11, %v1262_v9  ;;  %v1356_v9 = vsub.s32 5, %v4961_v14  ;;  %v5303_v11 = vpop.f32.mrb[15].mxu0 }
 0x43e   : > { %v1276_v15 = vpop.permute.xlu1 %1275 }
 0x43f   : > { %v1278_v18 = vadd.f32 %v1276_v15, %v1270_v13  ;;  %v1699_v13 = vld [vmem:[%s6013_s10] sm:$0xff]  ;;  %v1700_v15 = vld [vmem:[%s6013_s10 + $0x8] sm:$0xff] }
 0x441   : > { %v1285_v24 = vadd.f32 %v1283_v21, %v1278_v18  ;;  %v1717_v18 = vld [vmem:[%s6013_s10 + $0x90] sm:$0xff]  ;;  %v4323_v21 = vpack.c.bf16 %v1700_v15, %v1699_v13  ;;  %v1378_v13 = vsub.s32 7, %v4961_v14 }
 0x442   : > { %v1290_v27 = vpop.permute.xlu1 %1289 }
 0x443   : > { %v1292_v30 = vadd.f32 %v1290_v27, %v1285_v24  ;;  %v1718_v24 = vld [vmem:[%s6013_s10 + $0x98] sm:$0xff]  ;;  %v5317_v27 = vpop.f32.mrb[16].mxu0  ;;  %4324 = vmatprep.subr.bf16.mxu0 %v4323_v21 }
 0x444   : > { %4326 = vmatpush3.bf16.msra.mxu0 %v4323_v21  ;;  %v1312_v21 = vsub.s32 1, %v4961_v14 }
 0x445   : > { %v3550_v33 = vmul.f32 -1.442695, %v1292_v30  ;;  %v5319_v30 = vpack.c.bf16 %v1718_v24, %v1717_v18  ;;  %v1701_v24 = vld [vmem:[%s6013_s10 + $0x10] sm:$0xff] }
 0x447   : > { %4635 = vpow2.f32 %v3550_v33  ;;  %4400 = vmatprep.subr.bf16.mxu1 %v5319_v30 }
 0x448   : > { %4402 = vmatpush3.bf16.msra.mxu1 %v5319_v30 }
 0x451   : > { %v4636_v36 = vpop.eup %4635 }
 0x452   : > { %v1296_v17 = vadd.f32 1.0, %v4636_v36  ;;  %v1367_v36 = vsub.s32 6, %v4961_v14 }
 0x454   : > { %4637 = vrcp.f32 %v1296_v17  ;;  %v5323_v17 = vpop.f32.mrb[17].mxu0 }
 0x45e   : > { %v4638_v12 = vpop.eup %4637 }
 0x45f   : > { %v1346_v19 = vrot.slane %v4638_v12, %v1345_v42  ;;  %v1357_v33 = vrot.slane %v4638_v12, %v1356_v9  ;;  %v1719_v42 = vld [vmem:[%s6013_s10 + $0xa0] sm:$0xff]  ;;  %v1368_v9 = vrot.slane %v4638_v12, %v1367_v36  ;;  %v1379_v18 = vrot.slane %v4638_v12, %v1378_v13 }
 0x460   : > { %v5332_v51 = vpack.c.bf16 %v1720_v48, %v1719_v42  ;;  %v1313_v42 = vrot.slane %v4638_v12, %v1312_v21  ;;  %v1323_v48 = vsub.s32 2, %v4961_v14  ;;  %v1334_v13 = vsub.s32 3, %v4961_v14  ;;  %v1703_v21 = vld [vmem:[%s6013_s10 + $0x20] sm:$0xff]  ;;  %v1706_v14 = vld [vmem:[%s6013_s10 + $0x38] sm:$0xff] }
 0x461   : > { %1352 = vbcast.lane.b32.xlu1 %v1346_v19, 264  ;;  %1348 = vbcast.lane.b32.xlu0 %v1346_v19, 256  ;;  %v5334_v19 = vpop.f32.mrb[18].mxu0 }
 0x462   : > { %4364 = vmatprep.subr.bf16.mxu1 %v5332_v51  ;;  %v5338_v15 = vpop.f32.mrb[19].mxu0 }
 0x465   : > { %1363 = vbcast.lane.b32.xlu1 %v1357_v33, 264  ;;  %1359 = vbcast.lane.b32.xlu0 %v1357_v33, 256  ;;  %v1702_v33 = vld [vmem:[%s6013_s10 + $0x18] sm:$0xff] }
 0x466   : > { %v4327_v36 = vpack.c.bf16 %v1702_v33, %v1701_v24  ;;  %v1704_v24 = vld [vmem:[%s6013_s10 + $0x28] sm:$0xff]  ;;  %v1302_v33 = vrot.slane %v4638_v12, %v736_v16 }
 0x468   : > { %4328 = vmatprep.subr.bf16.mxu0 %v4327_v36 }
 0x469   : > { %1374 = vbcast.lane.b32.xlu1 %v1368_v9, 264  ;;  %1370 = vbcast.lane.b32.xlu0 %v1368_v9, 256  ;;  %v1324_v9 = vrot.slane %v4638_v12, %v1323_v48  ;;  %v1708_v48 = vld [vmem:[%s6013_s10 + $0x48] sm:$0xff] }
 0x46a   : > { %4330 = vmatpush3.bf16.msra.mxu0 %v4327_v36  ;;  %v4331_v36 = vpack.c.bf16 %v1704_v24, %v1703_v21 }
 0x46c   : > { %4332 = vmatprep.subr.bf16.mxu0 %v4331_v36 }
 0x46d   : > { %1385 = vbcast.lane.b32.xlu1 %v1379_v18, 264  ;;  %1381 = vbcast.lane.b32.xlu0 %v1379_v18, 256  ;;  %v1335_v18 = vrot.slane %v4638_v12, %v1334_v13  ;;  %v1707_v12 = vld [vmem:[%s6013_s10 + $0x40] sm:$0xff] }
 0x46e   : > { %3998 = vmatmul.mubr.f32.vlgmr.msra.gmra.mrb[20].mxu0 %v6019_v6  ;;  %v5382_v13 = vld [vmem:[%s6009_s6] ss:$0 sm:$0xff] }
 0x46f   : > { %4000 = vmatprep.mubr.f32.mxu0 %v6019_v6  ;;  %4334 = vmatpush3.bf16.msra.mxu0 %v4331_v36  ;;  %v5389_v36 = vld [vmem:[%s6012_s9] ss:$0 sm:$0xff] }
 0x471   : > { %1319 = vbcast.lane.b32.xlu1 %v1313_v42, 264  ;;  %1315 = vbcast.lane.b32.xlu0 %v1313_v42, 256  ;;  %v1705_v42 = vld [vmem:[%s6013_s10 + $0x30] sm:$0xff] }
 0x472   : > { %4001 = vmatmul.mubr.f32.gmra.mrb[22].mxu0 %v6019_v6  ;;  %v4335_v16 = vpack.c.bf16 %v1706_v14, %v1705_v42  ;;  %v5394_v42 = vld [vmem:[%s6010_s7] ss:$0 sm:$0xff] }
 0x473   : > { %4003 = vmatprep.mubr.f32.mxu0 %v6019_v6 }
 0x474   : > { %4336 = vmatprep.subr.bf16.mxu0 %v4335_v16 }
 0x475   : > { %1330 = vbcast.lane.b32.xlu1 %v1324_v9, 264  ;;  %1326 = vbcast.lane.b32.xlu0 %v1324_v9, 256  ;;  %v5376_v9 = vpack.c.bf16 %v1708_v48, %v1707_v12  ;;  %v1588_v12 = vadd.f32 %v5285_v39, %v5389_v36 }
 0x476   : > { %4004 = vmatmul.mubr.f32.gmra.mrb[24].mxu0 %v6019_v6 }
 0x477   : > { %4006 = vmatprep.mubr.f32.mxu0 %v6019_v6  ;;  %4338 = vmatpush3.bf16.msra.mxu0 %v4335_v16 }
 0x478   : > { %4340 = vmatprep.subr.bf16.mxu0 %v5376_v9 }
 0x479   : > { %1341 = vbcast.lane.b32.xlu1 %v1335_v18, 264  ;;  %1337 = vbcast.lane.b32.xlu0 %v1335_v18, 256 }
 0x47a   : > { %4007 = vmatmul.mubr.f32.gmra.mrb[26].mxu0 %v6019_v6 }
 0x47d   : > { %1308 = vbcast.lane.b32.xlu1 %v1302_v33, 264  ;;  %1304 = vbcast.lane.b32.xlu0 %v1302_v33, 256 }
 0x4d3   : > { %v1353_v18 = vpop.permute.xlu1 %1352  ;;  %v1349_v21 = vpop.permute.xlu0 %1348 }
 0x4d4   : > { %v1396_v24 = vmul.f32 %v1353_v18, %v5007_v35  ;;  %v1395_v33 = vmul.f32 %v1349_v21, %v5010_v37  ;;  %v1583_v35 = vadd.f32 %v5389_v36, %v5288_v47 }
 0x4d6   : > { %v1637_v14 = vmul.f32 %v5382_v13, %v1396_v24  ;;  %v1636_v16 = vmul.f32 %v5382_v13, %v1395_v33  ;;  %v1598_v24 = vadd.f32 %v5298_v25, %v5389_v36  ;;  %v1593_v33 = vadd.f32 %v5389_v36, %v5303_v11 }
 0x4d7   : > { %v1364_v37 = vpop.permute.xlu1 %1363  ;;  %v1360_v48 = vpop.permute.xlu0 %1359 }
 0x4d8   : > { %v1660_v18 = vadd.f32 %v5394_v42, %v1637_v14  ;;  %v1659_v21 = vadd.f32 %v5394_v42, %v1636_v16  ;;  %v1398_v6 = vmul.f32 %v1364_v37, %v5017_v38  ;;  %v1397_v7 = vmul.f32 %v1360_v48, %v5020_v40  ;;  %v1721_v14 = vld [vmem:[%s6013_s10 + $0xb0] sm:$0xff]  ;;  %v1722_v38 = vld [vmem:[%s6013_s10 + $0xb8] sm:$0xff] }
 0x4da   : > { %v1676_v39 = vadd.f32 %v1660_v18, %v1588_v12  ;;  %v1675_v5 = vadd.f32 %v1659_v21, %v1583_v35  ;;  %v1639_v47 = vmul.f32 %v5382_v13, %v1398_v6  ;;  %v1638_v4 = vmul.f32 %v5382_v13, %v1397_v7  ;;  %v1723_v21 = vld [vmem:[%s6013_s10 + $0xc0] sm:$0xff] }
 0x4db   : > { %v1375_v40 = vpop.permute.xlu1 %1374  ;;  %v1371_v16 = vpop.permute.xlu0 %1370  ;;  %v4367_v35 = vpack.c.bf16 %v1722_v38, %v1721_v14 }
 0x4dc   : > { %v5418_v25 = vmax.f32 %v1676_v39, 0.0  ;;  %v5420_v37 = vmax.f32 %v1675_v5, 0.0  ;;  %v1662_v11 = vadd.f32 %v5394_v42, %v1639_v47  ;;  %v1661_v6 = vadd.f32 %v5394_v42, %v1638_v4  ;;  %v1724_v5 = vld [vmem:[%s6013_s10 + $0xc8] sm:$0xff] }
 0x4dd   : > { %v1400_v7 = vmul.f32 %v1375_v40, %v5027_v41  ;;  %v1399_v12 = vmul.f32 %v1371_v16, %v5030_v43  ;;  %v1608_v43 = vadd.f32 %v5317_v27, %v5389_v36 }
 0x4de   : > { %v1678_v48 = vadd.f32 %v1662_v11, %v1598_v24  ;;  %v1677_v18 = vadd.f32 %v1661_v6, %v1593_v33  ;;  %4137 = vmatprep.mubr.msk.f32.mxu1 %vm530_vm1, %v5420_v37  ;;  %v1603_v24 = vadd.f32 %v5389_v36, %v5323_v17  ;;  %v5451_v17 = vpack.c.bf16 %v1724_v5, %v1723_v21 }
 0x4df   : > { %v1641_v4 = vmul.f32 %v5382_v13, %v1400_v7  ;;  %v1640_v41 = vmul.f32 %v5382_v13, %v1399_v12  ;;  %v1386_v33 = vpop.permute.xlu1 %1385  ;;  %v1382_v39 = vpop.permute.xlu0 %1381  ;;  %4138 = vmatmul.mubr.msk.f32.vlgmr.msra.gmra.mrb[2].mxu1 %vm530_vm1, %v5418_v25  ;;  %v1618_v7 = vadd.f32 %v5334_v19, %v5389_v36 }
 0x4e0   : > { %v5442_v47 = vmax.f32 %v1678_v48, 0.0  ;;  %v5444_v14 = vmax.f32 %v1677_v18, 0.0  ;;  %v1402_v38 = vmul.f32 %v1386_v33, %v5037_v44  ;;  %v1401_v40 = vmul.f32 %v1382_v39, %v5040_v46  ;;  %4366 = vmatpush3.bf16.msra.mxu1 %v5332_v51 }
 0x4e1   : > { %v1664_v27 = vadd.f32 %v5394_v42, %v1641_v4  ;;  %v1663_v16 = vadd.f32 %v5394_v42, %v1640_v41  ;;  %4368 = vmatprep.subr.bf16.mxu1 %v4367_v35  ;;  %v1613_v44 = vadd.f32 %v5389_v36, %v5338_v15  ;;  %v1558_v39 = vadd.f32 %v5273_v3, %v5389_v36 }
 0x4e2   : > { %v1643_v11 = vmul.f32 %v5382_v13, %v1402_v38  ;;  %v1642_v6 = vmul.f32 %v5382_v13, %v1401_v40  ;;  %4140 = vmatprep.mubr.msk.f32.mxu1 %vm530_vm1, %v5444_v14 }
 0x4e3   : > { %v1680_v46 = vadd.f32 %v1664_v27, %v1608_v43  ;;  %v1679_v51 = vadd.f32 %v1663_v16, %v1603_v24  ;;  %v1320_v12 = vpop.permute.xlu1 %1319  ;;  %v1316_v48 = vpop.permute.xlu0 %1315  ;;  %4141 = vmatmul.mubr.msk.f32.gmra.mrb[4].mxu1 %vm530_vm1, %v5442_v47 }
 0x4e4   : > { %v1666_v18 = vadd.f32 %v5394_v42, %v1643_v11  ;;  %v1665_v21 = vadd.f32 %v5394_v42, %v1642_v6  ;;  %v1390_v5 = vmul.f32 %v1320_v12, %v4977_v26  ;;  %v1389_v19 = vmul.f32 %v1316_v48, %v4967_v20  ;;  %4370 = vmatpush3.bf16.msra.mxu1 %v4367_v35  ;;  %v1725_v12 = vld [vmem:[%s6013_s10 + $0xd0] sm:$0xff] }
 0x4e5   : > { %v5467_v15 = vmax.f32 %v1680_v46, 0.0  ;;  %v5469_v4 = vmax.f32 %v1679_v51, 0.0  ;;  %4372 = vmatprep.subr.bf16.mxu1 %v5451_v17  ;;  %v1553_v26 = vadd.f32 %v5389_v36, %v5275_v50 }
 0x4e6   : > { %v1682_v41 = vadd.f32 %v1666_v18, %v1618_v7  ;;  %v1681_v43 = vadd.f32 %v1665_v21, %v1613_v44  ;;  %v1631_v24 = vmul.f32 %v5382_v13, %v1390_v5  ;;  %v1630_v33 = vmul.f32 %v5382_v13, %v1389_v19 }
 0x4e7   : > { %4143 = vmatprep.mubr.msk.f32.mxu1 %vm530_vm1, %v5469_v4  ;;  %v1331_v20 = vpop.permute.xlu1 %1330  ;;  %v1327_v35 = vpop.permute.xlu0 %1326  ;;  %v1568_v5 = vadd.f32 %v5277_v52, %v5389_v36  ;;  %v1563_v19 = vadd.f32 %v5389_v36, %v5279_v53  ;;  %v1728_v52 = vld [vmem:[%s6013_s10 + $0xe8] sm:$0xff]  ;;  %v1578_v53 = vadd.f32 %v5281_v10, %v5389_v36 }
 0x4e8   : > { %v5480_v38 = vmax.f32 %v1682_v41, 0.0  ;;  %v5482_v40 = vmax.f32 %v1681_v43, 0.0  ;;  %v1654_v27 = vadd.f32 %v5394_v42, %v1631_v24  ;;  %v1653_v16 = vadd.f32 %v5394_v42, %v1630_v33  ;;  %4144 = vmatmul.mubr.msk.f32.gmra.mrb[6].mxu1 %vm530_vm1, %v5467_v15 }
 0x4e9   : > { %v1392_v3 = vmul.f32 %v1331_v20, %v4987_v29  ;;  %v1391_v50 = vmul.f32 %v1327_v35, %v4990_v31  ;;  %v1726_v29 = vld [vmem:[%s6013_s10 + $0xd8] sm:$0xff] }
 0x4ea   : > { %v1670_v11 = vadd.f32 %v1654_v27, %v1558_v39  ;;  %v1669_v6 = vadd.f32 %v1653_v16, %v1553_v26  ;;  %4146 = vmatprep.mubr.msk.f32.mxu1 %vm530_vm1, %v5482_v40  ;;  %v1573_v39 = vadd.f32 %v5389_v36, %v5283_v8 }
 0x4eb   : > { %v1633_v7 = vmul.f32 %v5382_v13, %v1392_v3  ;;  %v1632_v44 = vmul.f32 %v5382_v13, %v1391_v50  ;;  %v1342_v46 = vpop.permute.xlu1 %1341  ;;  %v1338_v51 = vpop.permute.xlu0 %1337 }
 0x4ec   : > { %v5500_v31 = vmax.f32 %v1670_v11, 0.0  ;;  %v5502_v48 = vmax.f32 %v1669_v6, 0.0  ;;  %v1394_v18 = vmul.f32 %v1342_v46, %v4997_v32  ;;  %v1393_v21 = vmul.f32 %v1338_v51, %v5000_v34  ;;  %4147 = vmatmul.mubr.msk.f32.gmra.mrb[8].mxu1 %vm530_vm1, %v5480_v38  ;;  %v1727_v34 = vld [vmem:[%s6013_s10 + $0xe0] sm:$0xff] }
 0x4ed   : > { %v1656_v41 = vadd.f32 %v5394_v42, %v1633_v7  ;;  %v1655_v43 = vadd.f32 %v5394_v42, %v1632_v44  ;;  %v4375_v32 = vpack.c.bf16 %v1726_v29, %v1725_v12  ;;  %v4379_v8 = vpack.c.bf16 %v1728_v52, %v1727_v34  ;;  %v1731_v34 = vld [vmem:[%s6013_s10 + $0x100] sm:$0xff]  ;;  %v1732_v52 = vld [vmem:[%s6013_s10 + $0x108] sm:$0xff] }
 0x4ee   : > { %v1635_v24 = vmul.f32 %v5382_v13, %v1394_v18  ;;  %v1634_v33 = vmul.f32 %v5382_v13, %v1393_v21  ;;  %4157 = vmatprep.mubr.msk.f32.mxu1 %vm530_vm1, %v5502_v48  ;;  %v1710_v21 = vld [vmem:[%s6013_s10 + $0x58] sm:$0xff] }
 0x4ef   : > { %v1672_v26 = vadd.f32 %v1656_v41, %v1568_v5  ;;  %v1671_v20 = vadd.f32 %v1655_v43, %v1563_v19  ;;  %v1309_v35 = vpop.permute.xlu1 %1308  ;;  %v1305_v27 = vpop.permute.xlu0 %1304  ;;  %v6034_v5 = vmov 0.0   ;;  %v1729_v41 = vld [vmem:[%s6013_s10 + $0xf0] sm:$0xff]  ;;  %v1730_v43 = vld [vmem:[%s6013_s10 + $0xf8] sm:$0xff] }
 0x4f0   : > { %v1658_v16 = vadd.f32 %v5394_v42, %v1635_v24  ;;  %v1657_v3 = vadd.f32 %v5394_v42, %v1634_v33  ;;  %v1388_v50 = vmul.f32 %v1309_v35, %v4980_v28  ;;  %v1387_v11 = vmul.f32 %v1305_v27, %v4970_v22  ;;  %4158 = vmatmul.mubr.msk.f32.vlgmr.msra.gmra.mrb[10].mxu1 %vm530_vm1, %v5500_v31  ;;  %v1711_v24 = vld [vmem:[%s6013_s10 + $0x60] sm:$0xff]  ;;  %v1712_v33 = vld [vmem:[%s6013_s10 + $0x68] sm:$0xff]  ;;  %v1733_v35 = vld [vmem:[%s6013_s10 + $0x110] sm:$0xff] }
 0x4f1   : > { %v5534_v6 = vmax.f32 %v1672_v26, 0.0  ;;  %v5536_v10 = vmax.f32 %v1671_v20, 0.0  ;;  %4374 = vmatpush3.bf16.msra.mxu1 %v5451_v17  ;;  %v1548_v22 = vadd.f32 %v5269_v45, %v5389_v36  ;;  %v1543_v28 = vadd.f32 %v5389_v36, %v5271_v49  ;;  %v1714_v26 = vld [vmem:[%s6013_s10 + $0x78] sm:$0xff] }
 0x4f2   : > { %v1674_v7 = vadd.f32 %v1658_v16, %v1578_v53  ;;  %v1673_v44 = vadd.f32 %v1657_v3, %v1573_v39  ;;  %v1629_v46 = vmul.f32 %v5382_v13, %v1388_v50  ;;  %v1628_v51 = vmul.f32 %v5382_v13, %v1387_v11  ;;  %4376 = vmatprep.subr.bf16.mxu1 %v4375_v32  ;;  %v1713_v39 = vld [vmem:[%s6013_s10 + $0x70] sm:$0xff]  ;;  %v1734_v27 = vld [vmem:[%s6013_s10 + $0x118] sm:$0xff]  ;;  %v3243_v3 = vld [vmem:[%s6015_s12] sm:$0xff] }
 0x4f3   : > { %4160 = vmatprep.mubr.msk.f32.mxu1 %vm530_vm1, %v5536_v10  ;;  %v4347_v53 = vpack.c.bf16 %v1712_v33, %v1711_v24  ;;  %v4351_v20 = vpack.c.bf16 %v1714_v26, %v1713_v39  ;;  %v4391_v16 = vpack.c.bf16 %v1734_v27, %v1733_v35  ;;  %v3244_v50 = vld [vmem:[%s6015_s12 + $0x8] sm:$0xff] }
 0x4f4   : > { %v5547_v12 = vmax.f32 %v1674_v7, 0.0  ;;  %v5549_v17 = vmax.f32 %v1673_v44, 0.0  ;;  %v1652_v29 = vadd.f32 %v5394_v42, %v1629_v46  ;;  %v1651_v18 = vadd.f32 %v5394_v42, %v1628_v51  ;;  %4161 = vmatmul.mubr.msk.f32.gmra.mrb[12].mxu1 %vm530_vm1, %v5534_v6  ;;  %v1709_v42 = vld [vmem:[%s6013_s10 + $0x50] sm:$0xff] }
 0x4f5   : > { %4378 = vmatpush3.bf16.msra.mxu1 %v4375_v32  ;;  %v4343_v19 = vpack.c.bf16 %v1710_v21, %v1709_v42  ;;  %v4383_v32 = vpack.c.bf16 %v1730_v43, %v1729_v41  ;;  %v4395_v11 = vpack.c.bf16 %v3244_v50, %v3243_v3 }
 0x4f6   : > { %v1668_v13 = vadd.f32 %v1652_v29, %v1548_v22  ;;  %v1667_v45 = vadd.f32 %v1651_v18, %v1543_v28  ;;  %4163 = vmatprep.mubr.msk.f32.mxu1 %vm530_vm1, %v5549_v17  ;;  %4380 = vmatprep.subr.bf16.mxu1 %v4379_v8 }
 0x4f8   : > { %v5557_v49 = vmax.f32 %v1668_v13, 0.0  ;;  %v5559_v36 = vmax.f32 %v1667_v45, 0.0  ;;  %4164 = vmatmul.mubr.msk.f32.gmra.mrb[14].mxu1 %vm530_vm1, %v5547_v12 }
 0x4f9   : > { %4166 = vmatprep.mubr.msk.f32.mxu1 %vm530_vm1, %v5420_v37 }
 0x4fa   : > { %4009 = vmatprep.mubr.msk.f32.mxu0 %vm530_vm1, %v5559_v36 }
 0x4fb   : > { %4010 = vmatmul.mubr.msk.f32.gmra.mrb[28].mxu0 %vm530_vm1, %v5557_v49 }
 0x4fc   : > { %4167 = vmatmul.mubr.msk.f32.gmra.mrb[16].mxu1 %vm530_vm1, %v5418_v25  ;;  %4012 = vmatprep.mubr.msk.f32.mxu0 %vm530_vm1, %v5502_v48 }
 0x4fd   : > { %4169 = vmatprep.mubr.msk.f32.mxu1 %vm530_vm1, %v5444_v14 }
 0x4ff   : > { %4013 = vmatmul.mubr.msk.f32.gmra.mrb[30].mxu0 %vm530_vm1, %v5500_v31 }
 0x500   : > { %4170 = vmatmul.mubr.msk.f32.gmra.mrb[2].mxu1 %vm530_vm1, %v5442_v47  ;;  %4015 = vmatprep.mubr.msk.f32.mxu0 %vm530_vm1, %v5536_v10 }
 0x501   : > { %4172 = vmatprep.mubr.msk.f32.mxu1 %vm530_vm1, %v5469_v4 }
 0x503   : > { %4016 = vmatmul.mubr.msk.f32.gmra.mrb[32].mxu0 %vm530_vm1, %v5534_v6 }
 0x504   : > { %4173 = vmatmul.mubr.msk.f32.gmra.mrb[4].mxu1 %vm530_vm1, %v5467_v15  ;;  %4018 = vmatprep.mubr.msk.f32.mxu0 %vm530_vm1, %v5549_v17 }
 0x505   : > { %4175 = vmatprep.mubr.msk.f32.mxu1 %vm530_vm1, %v5482_v40 }
 0x507   : > { %4019 = vmatmul.mubr.msk.f32.gmra.mrb[34].mxu0 %vm530_vm1, %v5547_v12 }
 0x508   : > { %4176 = vmatmul.mubr.msk.f32.gmra.mrb[6].mxu1 %vm530_vm1, %v5480_v38  ;;  %4029 = vmatprep.mubr.f32.mxu0 %v6034_v5 }
 0x509   : > { %4178 = vmatprep.mubr.f32.mxu1 %v6034_v5 }
 0x50b   : > { %4030 = vmatmul.mubr.f32.vlgmr.msra.gmra.mrb[20].mxu0 %v6034_v5 }
 0x50c   : > { %4179 = vmatmul.mubr.f32.gmra.mrb[8].mxu1 %v6034_v5  ;;  %4032 = vmatprep.mubr.f32.mxu0 %v6034_v5 }
 0x50d   : > { %4189 = vmatprep.mubr.msk.f32.mxu1 %vm530_vm1, %v5536_v10  ;;  %4342 = vmatpush3.bf16.msra.mxu0 %v5376_v9  ;;  %v4387_v9 = vpack.c.bf16 %v1732_v52, %v1731_v34 }
 0x50e   : > { %4344 = vmatprep.subr.bf16.mxu0 %v4343_v19 }
 0x50f   : > { %4033 = vmatmul.mubr.f32.gmra.mrb[22].mxu0 %v6034_v5 }
 0x510   : > { %4190 = vmatmul.mubr.msk.f32.vlgmr.msra.gmra.mrb[10].mxu1 %vm530_vm1, %v5534_v6  ;;  %4035 = vmatprep.mubr.f32.mxu0 %v6034_v5 }
 0x511   : > { %4382 = vmatpush3.bf16.msra.mxu1 %v4379_v8  ;;  %4192 = vmatprep.mubr.msk.f32.mxu1 %vm530_vm1, %v5549_v17 }
 0x512   : > { %4384 = vmatprep.subr.bf16.mxu1 %v4383_v32  ;;  %4346 = vmatpush3.bf16.msra.mxu0 %v4343_v19 }
 0x513   : > { %4036 = vmatmul.mubr.f32.gmra.mrb[24].mxu0 %v6034_v5  ;;  %4348 = vmatprep.subr.bf16.mxu0 %v4347_v53 }
 0x514   : > { %4193 = vmatmul.mubr.msk.f32.gmra.mrb[12].mxu1 %vm530_vm1, %v5547_v12  ;;  %4038 = vmatprep.mubr.msk.f32.mxu0 %vm530_vm1, %v5559_v36 }
 0x515   : > { %4195 = vmatprep.mubr.msk.f32.mxu1 %vm530_vm1, %v5420_v37  ;;  %4386 = vmatpush3.bf16.msra.mxu1 %v4383_v32 }
 0x516   : > { %4388 = vmatprep.subr.bf16.mxu1 %v4387_v9 }
 0x517   : > { %4039 = vmatmul.mubr.msk.f32.gmra.mrb[26].mxu0 %vm530_vm1, %v5557_v49 }
 0x518   : > { %4196 = vmatmul.mubr.msk.f32.gmra.mrb[14].mxu1 %vm530_vm1, %v5418_v25  ;;  %4041 = vmatprep.mubr.msk.f32.mxu0 %vm530_vm1, %v5502_v48 }
 0x519   : > { %4198 = vmatprep.mubr.msk.f32.mxu1 %vm530_vm1, %v5444_v14 }
 0x51b   : > { %4042 = vmatmul.mubr.msk.f32.gmra.mrb[28].mxu0 %vm530_vm1, %v5500_v31 }
 0x51c   : > { %4199 = vmatmul.mubr.msk.f32.gmra.mrb[16].mxu1 %vm530_vm1, %v5442_v47  ;;  %4044 = vmatprep.mubr.msk.f32.mxu0 %vm530_vm1, %v5536_v10 }
 0x51d   : > { %4201 = vmatprep.mubr.msk.f32.mxu1 %vm530_vm1, %v5469_v4 }
 0x51f   : > { %4045 = vmatmul.mubr.msk.f32.gmra.mrb[30].mxu0 %vm530_vm1, %v5534_v6 }
 0x520   : > { %4202 = vmatmul.mubr.msk.f32.gmra.mrb[2].mxu1 %vm530_vm1, %v5467_v15  ;;  %4047 = vmatprep.mubr.msk.f32.mxu0 %vm530_vm1, %v5549_v17 }
 0x521   : > { %4204 = vmatprep.mubr.msk.f32.mxu1 %vm530_vm1, %v5482_v40 }
 0x523   : > { %4048 = vmatmul.mubr.msk.f32.gmra.mrb[32].mxu0 %vm530_vm1, %v5547_v12 }
 0x524   : > { %4205 = vmatmul.mubr.msk.f32.gmra.mrb[4].mxu1 %vm530_vm1, %v5480_v38  ;;  %4050 = vmatprep.mubr.msk.f32.mxu0 %vm530_vm1, %v5420_v37 }
 0x525   : > { %4207 = vmatprep.mubr.f32.mxu1 %v6034_v5 }
 0x527   : > { %4051 = vmatmul.mubr.msk.f32.gmra.mrb[34].mxu0 %vm530_vm1, %v5418_v25 }
 0x528   : > { %4208 = vmatmul.mubr.f32.gmra.mrb[6].mxu1 %v6034_v5  ;;  %4061 = vmatprep.mubr.f32.mxu0 %v6034_v5 }
 0x529   : > { %4210 = vmatprep.mubr.f32.mxu1 %v6034_v5 }
 0x52b   : > { %4062 = vmatmul.mubr.f32.vlgmr.msra.gmra.mrb[20].mxu0 %v6034_v5 }
 0x52c   : > { %4211 = vmatmul.mubr.f32.gmra.mrb[8].mxu1 %v6034_v5  ;;  %4064 = vmatprep.mubr.f32.mxu0 %v6034_v5 }
 0x52d   : > { %4221 = vmatprep.mubr.msk.f32.mxu1 %vm530_vm1, %v5549_v17  ;;  %4350 = vmatpush3.bf16.msra.mxu0 %v4347_v53 }
 0x52e   : > { %4352 = vmatprep.subr.bf16.mxu0 %v4351_v20 }
 0x52f   : > { %4065 = vmatmul.mubr.f32.gmra.mrb[22].mxu0 %v6034_v5 }
 0x530   : > { %4222 = vmatmul.mubr.msk.f32.vlgmr.msra.gmra.mrb[10].mxu1 %vm530_vm1, %v5547_v12  ;;  %4067 = vmatprep.mubr.msk.f32.mxu0 %vm530_vm1, %v5559_v36 }
 0x531   : > { %4390 = vmatpush3.bf16.msra.mxu1 %v4387_v9  ;;  %4224 = vmatprep.mubr.msk.f32.mxu1 %vm530_vm1, %v5420_v37 }
 0x532   : > { %4392 = vmatprep.subr.bf16.mxu1 %v4391_v16  ;;  %4354 = vmatpush3.bf16.msra.mxu0 %v4351_v20 }
 0x533   : > { %4068 = vmatmul.mubr.msk.f32.gmra.mrb[24].mxu0 %vm530_vm1, %v5557_v49  ;;  %4356 = vmatprep.subr.bf16.mxu0 %v5296_v23 }
 0x534   : > { %4225 = vmatmul.mubr.msk.f32.gmra.mrb[12].mxu1 %vm530_vm1, %v5418_v25  ;;  %4070 = vmatprep.mubr.msk.f32.mxu0 %vm530_vm1, %v5502_v48 }
 0x535   : > { %4227 = vmatprep.mubr.msk.f32.mxu1 %vm530_vm1, %v5444_v14  ;;  %4394 = vmatpush3.bf16.msra.mxu1 %v4391_v16 }
 0x536   : > { %4396 = vmatprep.subr.bf16.mxu1 %v4395_v11 }
 0x537   : > { %4071 = vmatmul.mubr.msk.f32.gmra.mrb[26].mxu0 %vm530_vm1, %v5500_v31 }
 0x538   : > { %4228 = vmatmul.mubr.msk.f32.gmra.mrb[14].mxu1 %vm530_vm1, %v5442_v47  ;;  %4073 = vmatprep.mubr.msk.f32.mxu0 %vm530_vm1, %v5536_v10 }
 0x539   : > { %4230 = vmatprep.mubr.msk.f32.mxu1 %vm530_vm1, %v5469_v4 }
 0x53b   : > { %4074 = vmatmul.mubr.msk.f32.gmra.mrb[28].mxu0 %vm530_vm1, %v5534_v6 }
 0x53c   : > { %4231 = vmatmul.mubr.msk.f32.gmra.mrb[16].mxu1 %vm530_vm1, %v5467_v15  ;;  %4076 = vmatprep.mubr.msk.f32.mxu0 %vm530_vm1, %v5549_v17 }
 0x53d   : > { %4233 = vmatprep.mubr.msk.f32.mxu1 %vm530_vm1, %v5482_v40 }
 0x53f   : > { %4077 = vmatmul.mubr.msk.f32.gmra.mrb[30].mxu0 %vm530_vm1, %v5547_v12 }
 0x540   : > { %4234 = vmatmul.mubr.msk.f32.gmra.mrb[2].mxu1 %vm530_vm1, %v5480_v38  ;;  %4079 = vmatprep.mubr.msk.f32.mxu0 %vm530_vm1, %v5420_v37 }
 0x541   : > { %4236 = vmatprep.mubr.f32.mxu1 %v6034_v5 }
 0x543   : > { %4080 = vmatmul.mubr.msk.f32.gmra.mrb[32].mxu0 %vm530_vm1, %v5418_v25 }
 0x544   : > { %4237 = vmatmul.mubr.f32.gmra.mrb[4].mxu1 %v6034_v5  ;;  %4082 = vmatprep.mubr.msk.f32.mxu0 %vm530_vm1, %v5444_v14 }
 0x545   : > { %4239 = vmatprep.mubr.f32.mxu1 %v6034_v5 }
 0x547   : > { %4083 = vmatmul.mubr.msk.f32.gmra.mrb[34].mxu0 %vm530_vm1, %v5442_v47 }
 0x548   : > { %4240 = vmatmul.mubr.f32.gmra.mrb[6].mxu1 %v6034_v5  ;;  %4093 = vmatprep.mubr.f32.mxu0 %v6034_v5 }
 0x549   : > { %4242 = vmatprep.mubr.f32.mxu1 %v6034_v5 }
 0x54b   : > { %4094 = vmatmul.mubr.f32.vlgmr.msra.gmra.mrb[20].mxu0 %v6034_v5 }
 0x54c   : > { %4243 = vmatmul.mubr.f32.gmra.mrb[8].mxu1 %v6034_v5  ;;  %4096 = vmatprep.mubr.msk.f32.mxu0 %vm530_vm1, %v5559_v36 }
 0x54d   : > { %4253 = vmatprep.mubr.msk.f32.mxu1 %vm530_vm1, %v5420_v37  ;;  %4358 = vmatpush3.bf16.msra.mxu0 %v5296_v23  ;;  %v5869_v23 = vld [vmem:[%s6014_s11] ss:$0 sm:$0xff] }
 0x54e   : > { %4360 = vmatprep.subr.bf16.mxu0 %v5319_v30 }
 0x54f   : > { %4097 = vmatmul.mubr.msk.f32.gmra.mrb[22].mxu0 %vm530_vm1, %v5557_v49 }
 0x550   : > { %4254 = vmatmul.mubr.msk.f32.vlgmr.msra.gmra.mrb[10].mxu1 %vm530_vm1, %v5418_v25  ;;  %4099 = vmatprep.mubr.msk.f32.mxu0 %vm530_vm1, %v5502_v48 }
 0x551   : > { %4398 = vmatpush3.bf16.msra.mxu1 %v4395_v11  ;;  %4256 = vmatprep.mubr.msk.f32.mxu1 %vm530_vm1, %v5444_v14 }
 0x552   : > { %4362 = vmatpush3.bf16.msra.mxu0 %v5319_v30 }
 0x553   : > { %4100 = vmatmul.mubr.msk.f32.gmra.mrb[24].mxu0 %vm530_vm1, %v5500_v31 }
 0x554   : > { %4257 = vmatmul.mubr.msk.f32.gmra.mrb[12].mxu1 %vm530_vm1, %v5442_v47  ;;  %4102 = vmatprep.mubr.msk.f32.mxu0 %vm530_vm1, %v5536_v10 }
 0x555   : > { %4259 = vmatprep.mubr.msk.f32.mxu1 %vm530_vm1, %v5469_v4 }
 0x557   : > { %4103 = vmatmul.mubr.msk.f32.gmra.mrb[26].mxu0 %vm530_vm1, %v5534_v6 }
 0x558   : > { %4260 = vmatmul.mubr.msk.f32.gmra.mrb[14].mxu1 %vm530_vm1, %v5467_v15  ;;  %4105 = vmatprep.mubr.msk.f32.mxu0 %vm530_vm1, %v5549_v17 }
 0x559   : > { %4262 = vmatprep.mubr.msk.f32.mxu1 %vm530_vm1, %v5482_v40 }
 0x55b   : > { %4106 = vmatmul.mubr.msk.f32.gmra.mrb[28].mxu0 %vm530_vm1, %v5547_v12 }
 0x55c   : > { %4263 = vmatmul.mubr.msk.f32.gmra.mrb[16].mxu1 %vm530_vm1, %v5480_v38  ;;  %4108 = vmatprep.mubr.msk.f32.mxu0 %vm530_vm1, %v5420_v37 }
 0x55d   : > { %4265 = vmatprep.mubr.f32.mxu1 %v6034_v5 }
 0x55f   : > { %4109 = vmatmul.mubr.msk.f32.gmra.mrb[30].mxu0 %vm530_vm1, %v5418_v25 }
 0x560   : > { %4266 = vmatmul.mubr.f32.gmra.mrb[2].mxu1 %v6034_v5  ;;  %4111 = vmatprep.mubr.msk.f32.mxu0 %vm530_vm1, %v5444_v14 }
 0x561   : > { %4268 = vmatprep.mubr.f32.mxu1 %v6034_v5 }
 0x563   : > { %4112 = vmatmul.mubr.msk.f32.gmra.mrb[32].mxu0 %vm530_vm1, %v5442_v47 }
 0x564   : > { %4269 = vmatmul.mubr.f32.gmra.mrb[4].mxu1 %v6034_v5  ;;  %4114 = vmatprep.mubr.msk.f32.mxu0 %vm530_vm1, %v5469_v4  ;;  %v5880_v4 = vld [vmem:[%s6016_s13] ss:$0 sm:$0xff] }
 0x565   : > { %4271 = vmatprep.mubr.f32.mxu1 %v6034_v5 }
 0x567   : > { %4115 = vmatmul.mubr.msk.f32.gmra.mrb[34].mxu0 %vm530_vm1, %v5467_v15 }
 0x568   : > { %4272 = vmatmul.mubr.f32.gmra.mrb[6].mxu1 %v6034_v5  ;;  %4125 = vmatprep.mubr.msk.f32.mxu0 %vm530_vm1, %v5559_v36 }
 0x569   : > { %4274 = vmatprep.mubr.f32.mxu1 %v6034_v5 }
 0x56b   : > { %4126 = vmatmul.mubr.msk.f32.vlgmr.msra.gmra.mrb[20].mxu0 %vm530_vm1, %v5557_v49 }
 0x56c   : > { %4275 = vmatmul.mubr.f32.gmra.mrb[8].mxu1 %v6034_v5  ;;  %4128 = vmatprep.mubr.msk.f32.mxu0 %vm530_vm1, %v5502_v48 }
 0x56d   : > { %4281 = vmatprep.mubr.msk.f32.mxu1 %vm1078_vm10, %v5183_v54  ;;  %v6035_v54 = vld [vmem:[#allocation7_spill] sm:$0xff] }
 0x56f   : > { %4129 = vmatmul.mubr.msk.f32.gmra.mrb[22].mxu0 %vm530_vm1, %v5500_v31 }
 0x570   : > { %4282 = vmatmul.mubr.msk.f32.vlgmr.msra.gmra.mrb[10].mxu1 %vm1078_vm10, %v5188_v55  ;;  %4131 = vmatprep.mubr.msk.f32.mxu0 %vm530_vm1, %v5536_v10  ;;  %v6036_v55 = vld [vmem:[#allocation8_spill] sm:$0xff] }
 0x571   : > { %4284 = vmatprep.mubr.msk.f32.mxu1 %vm1078_vm10, %v5191_v56  ;;  %v6037_v56 = vld [vmem:[#allocation9_spill] sm:$0xff] }
 0x573   : > { %4132 = vmatmul.mubr.msk.f32.gmra.mrb[24].mxu0 %vm530_vm1, %v5534_v6 }
 0x574   : > { %4285 = vmatmul.mubr.msk.f32.gmra.mrb[12].mxu1 %vm1078_vm10, %v5198_v57  ;;  %4134 = vmatprep.mubr.msk.f32.mxu0 %vm530_vm1, %v5549_v17 }
 0x575   : > { %4287 = vmatprep.mubr.msk.f32.mxu1 %vm1078_vm10, %v5201_v58 }
 0x577   : > { %4135 = vmatmul.mubr.msk.f32.gmra.mrb[26].mxu0 %vm530_vm1, %v5547_v12 }
 0x578   : > { %4288 = vmatmul.mubr.msk.f32.gmra.mrb[14].mxu1 %vm1078_vm10, %v5208_v59 }
 0x579   : > { %4290 = vmatprep.mubr.msk.f32.mxu1 %vm1078_vm10, %v5211_v60 }
 0x57c   : > { %4291 = vmatmul.mubr.msk.f32.gmra.mrb[16].mxu1 %vm1078_vm10, %v5218_v61 }
 0x57d   : > { %4293 = vmatprep.mubr.msk.f32.mxu1 %vm1078_vm10, %v5221_v62 }
 0x580   : > { %4294 = vmatmul.mubr.msk.f32.gmra.mrb[2].mxu1 %vm1078_vm10, %v5228_v63 }
 0x581   : > { %4296 = vmatprep.mubr.msk.f32.mxu1 %vm1078_vm10, %v5231_v0 }
 0x584   : > { %4297 = vmatmul.mubr.msk.f32.gmra.mrb[4].mxu1 %vm1078_vm10, %v5238_v1 }
 0x585   : > { %4299 = vmatprep.mubr.msk.f32.mxu1 %vm1078_vm10, %v5241_v2 }
 0x588   : > { %4300 = vmatmul.mubr.msk.f32.gmra.mrb[6].mxu1 %vm1078_vm10, %v6035_v54 }
 0x589   : > { %4302 = vmatprep.mubr.msk.f32.mxu1 %vm1078_vm10, %v6036_v55 }
 0x58c   : > { %4303 = vmatmul.mubr.msk.f32.gmra.mrb[8].mxu1 %vm1078_vm10, %v6037_v56 }
 0x62e   : > { %v4107_v57 = vpop.f32.mrb[28].mxu0 }
 0x62f   : > { %v2377_v58 = vpop.f32.mrb[29].mxu0  ;;  %v4427_v52 = vadd.f32 %v4107_v57, %v5869_v23 }
 0x630   : > { %v4430_v39 = vadd.f32 %v5869_v23, %v2377_v58 }
 0x631   : > { %v4428_v11 = vadd.f32 %v4427_v52, %v5880_v4 }
 0x632   : > { %v5854_v59 = vpop.f32.mrb[30].mxu0  ;;  %v4431_v57 = vadd.f32 %v4430_v39, %v5880_v4 }
 0x633   : > { %v5856_v60 = vpop.f32.mrb[31].mxu0  ;;  %v4433_v3 = vadd.f32 %v5854_v59, %v5869_v23 }
 0x634   : > { %v4436_v54 = vadd.f32 %v5869_v23, %v5856_v60 }
 0x636   : > { %v5858_v61 = vpop.f32.mrb[32].mxu0 }
 0x637   : > { %v5860_v62 = vpop.f32.mrb[33].mxu0  ;;  %v4439_v59 = vadd.f32 %v5858_v61, %v5869_v23 }
 0x638   : > { %v4442_v60 = vadd.f32 %v5869_v23, %v5860_v62 }
 0x639   : > { %v4440_v62 = vadd.f32 %v4439_v59, %v5880_v4 }
 0x63a   : > { %v5862_v63 = vpop.f32.mrb[34].mxu0 }
 0x63b   : > { %v5864_v0 = vpop.f32.mrb[35].mxu0  ;;  %v4445_v61 = vadd.f32 %v5862_v63, %v5869_v23 }
 0x63e   : > { %v4127_v1 = vpop.f32.mrb[20].mxu0 }
 0x63f   : > { %v2504_v2 = vpop.f32.mrb[21].mxu0  ;;  %v4403_v30 = vadd.f32 %v4127_v1, %v5869_v23 }
 0x640   : > { %v4406_v37 = vadd.f32 %v5869_v23, %v2504_v2 }
 0x642   : > { %v4130_v25 = vpop.f32.mrb[22].mxu0 }
 0x643   : > { %v4409_v47 = vadd.f32 %v4130_v25, %v5869_v23  ;;  %v4283_v14 = vpop.f32.mrb[10].mxu1  ;;  %v2514_v15 = vpop.f32.mrb[23].mxu0  ;;  %v4434_v25 = vadd.f32 %v4433_v3, %v5880_v4 }
 0x644   : > { %v4404_v38 = vadd.f32 %v4403_v30, %v4283_v14  ;;  %v4412_v40 = vadd.f32 %v5869_v23, %v2514_v15  ;;  %v3318_v31 = vpop.f32.mrb[11].mxu1  ;;  %v4437_v14 = vadd.f32 %v4436_v54, %v5880_v4 }
 0x645   : > { %v4407_v48 = vadd.f32 %v4406_v37, %v3318_v31  ;;  %v4410_v6 = vadd.f32 %v4409_v47, %v5880_v4 }
 0x646   : > { %v4405_v10 = vadd.f32 %v4404_v38, %v5880_v4  ;;  %v4133_v8 = vpop.f32.mrb[24].mxu0  ;;  %v4413_v7 = vadd.f32 %v4412_v40, %v5880_v4 }
 0x647   : > { %v4408_v44 = vadd.f32 %v4407_v48, %v5880_v4  ;;  %v4415_v46 = vadd.f32 %v4133_v8, %v5869_v23  ;;  %v4286_v51 = vpop.f32.mrb[12].mxu1  ;;  %v2524_v22 = vpop.f32.mrb[25].mxu0  ;;  %v4448_v48 = vadd.f32 %v5869_v23, %v5864_v0  ;;  %v4443_v8 = vadd.f32 %v4442_v60, %v5880_v4 }
 0x648   : > { %v3414_v28 = vmax.f32 %v4405_v10, 0.0  ;;  %v4411_v12 = vadd.f32 %v4410_v6, %v4286_v51  ;;  %v4418_v17 = vadd.f32 %v5869_v23, %v2524_v22  ;;  %v3328_v29 = vpop.f32.mrb[13].mxu1  ;;  %v4446_v51 = vadd.f32 %v4445_v61, %v5880_v4 }
 0x649   : > { %v3413_v18 = vmax.f32 %v4408_v44, 0.0  ;;  %v4414_v13 = vadd.f32 %v4413_v7, %v3328_v29  ;;  %v4416_v45 = vadd.f32 %v4415_v46, %v5880_v4 }
 0x64a   : > { %3430 = vst.msk [vmem:[%s5890_s24 + $0x8] sm:$0xff] %vm530_vm1, %v3414_v28  ;;  %v3416_v49 = vmax.f32 %v4411_v12, 0.0  ;;  %v4136_v36 = vpop.f32.mrb[26].mxu0  ;;  %v4419_v42 = vadd.f32 %v4418_v17, %v5880_v4 }
 0x64b   : > { %3429 = vst.msk [vmem:[%s5890_s24] sm:$0xff] %vm530_vm1, %v3413_v18  ;;  %v3415_v21 = vmax.f32 %v4414_v13, 0.0  ;;  %v4421_v5 = vadd.f32 %v4136_v36, %v5869_v23  ;;  %v4289_v19 = vpop.f32.mrb[14].mxu1  ;;  %v2534_v41 = vpop.f32.mrb[27].mxu0 }
 0x64c   : > { %3432 = vst.msk [vmem:[%s5890_s24 + $0x18] sm:$0xff] %vm530_vm1, %v3416_v49  ;;  %v4417_v43 = vadd.f32 %v4416_v45, %v4289_v19  ;;  %v4424_v24 = vadd.f32 %v5869_v23, %v2534_v41  ;;  %v3338_v33 = vpop.f32.mrb[15].mxu1  ;;  %v4449_v23 = vadd.f32 %v4448_v48, %v5880_v4 }
 0x64d   : > { %3431 = vst.msk [vmem:[%s5890_s24 + $0x10] sm:$0xff] %vm530_vm1, %v3415_v21  ;;  %v4420_v32 = vadd.f32 %v4419_v42, %v3338_v33  ;;  %v4422_v34 = vadd.f32 %v4421_v5, %v5880_v4 }
 0x64e   : > { %v3418_v53 = vmax.f32 %v4417_v43, 0.0  ;;  %v4425_v9 = vadd.f32 %v4424_v24, %v5880_v4 }
 0x64f   : > { %v3417_v26 = vmax.f32 %v4420_v32, 0.0  ;;  %v4292_v20 = vpop.f32.mrb[16].mxu1 }
 0x650   : > { %3434 = vst.msk [vmem:[%s5890_s24 + $0x28] sm:$0xff] %vm530_vm1, %v3418_v53  ;;  %v4423_v35 = vadd.f32 %v4422_v34, %v4292_v20  ;;  %v3348_v27 = vpop.f32.mrb[17].mxu1 }
 0x651   : > { %3433 = vst.msk [vmem:[%s5890_s24 + $0x20] sm:$0xff] %vm530_vm1, %v3417_v26  ;;  %v4426_v16 = vadd.f32 %v4425_v9, %v3348_v27 }
 0x652   : > { %v3420_v50 = vmax.f32 %v4423_v35, 0.0 }
 0x653   : > { %v3419_v55 = vmax.f32 %v4426_v16, 0.0  ;;  %v4295_v56 = vpop.f32.mrb[2].mxu1 }
 0x654   : > { %3436 = vst.msk [vmem:[%s5890_s24 + $0x38] sm:$0xff] %vm530_vm1, %v3420_v50  ;;  %v4429_v58 = vadd.f32 %v4428_v11, %v4295_v56  ;;  %v3358_v1 = vpop.f32.mrb[3].mxu1 }
 0x655   : > { %3435 = vst.msk [vmem:[%s5890_s24 + $0x30] sm:$0xff] %vm530_vm1, %v3419_v55  ;;  %v4432_v2 = vadd.f32 %v4431_v57, %v3358_v1 }
 0x656   : > { %v3422_v30 = vmax.f32 %v4429_v58, 0.0 }
 0x657   : > { %v3421_v37 = vmax.f32 %v4432_v2, 0.0  ;;  %v4298_v47 = vpop.f32.mrb[4].mxu1 }
 0x658   : > { %3438 = vst.msk [vmem:[%s5890_s24 + $0x48] sm:$0xff] %vm530_vm1, %v3422_v30  ;;  %v4435_v15 = vadd.f32 %v4434_v25, %v4298_v47  ;;  %v3368_v38 = vpop.f32.mrb[5].mxu1 }
 0x659   : > { %3437 = vst.msk [vmem:[%s5890_s24 + $0x40] sm:$0xff] %vm530_vm1, %v3421_v37  ;;  %v4438_v40 = vadd.f32 %v4437_v14, %v3368_v38 }
 0x65a   : > { %v3424_v31 = vmax.f32 %v4435_v15, 0.0 }
 0x65b   : > { %v3423_v6 = vmax.f32 %v4438_v40, 0.0  ;;  %v4301_v10 = vpop.f32.mrb[6].mxu1 }
 0x65c   : > { %3440 = vst.msk [vmem:[%s5890_s24 + $0x58] sm:$0xff] %vm530_vm1, %v3424_v31  ;;  %v4441_v7 = vadd.f32 %v4440_v62, %v4301_v10  ;;  %v3378_v44 = vpop.f32.mrb[7].mxu1 }
 0x65d   : > { %3439 = vst.msk [vmem:[%s5890_s24 + $0x50] sm:$0xff] %vm530_vm1, %v3423_v6  ;;  %v4444_v63 = vadd.f32 %v4443_v8, %v3378_v44 }
 0x65e   : > { %v3426_v46 = vmax.f32 %v4441_v7, 0.0 }
 0x65f   : > { %v3425_v22 = vmax.f32 %v4444_v63, 0.0  ;;  %v4304_v0 = vpop.f32.mrb[8].mxu1 }
 0x660   : > { %3442 = vst.msk [vmem:[%s5890_s24 + $0x68] sm:$0xff] %vm530_vm1, %v3426_v46  ;;  %v4447_v28 = vadd.f32 %v4446_v51, %v4304_v0  ;;  %v3388_v12 = vpop.f32.mrb[9].mxu1 }
 0x661   : > { %3441 = vst.msk [vmem:[%s5890_s24 + $0x60] sm:$0xff] %vm530_vm1, %v3425_v22  ;;  %v4450_v17 = vadd.f32 %v4449_v23, %v3388_v12 }
 0x662   : > { %v3428_v29 = vmax.f32 %v4447_v28, 0.0 }
 0x663   : > { %v3427_v4 = vmax.f32 %v4450_v17, 0.0 }
 0x664   : > { %3444 = vst.msk [vmem:[%s5890_s24 + $0x78] sm:$0xff] %vm530_vm1, %v3428_v29 }
 0x665   : > { %3443 = vst.msk [vmem:[%s5890_s24 + $0x70] sm:$0xff] %vm530_vm1, %v3427_v4 }
 0x666   : > { %4652 = shalt.err (!%p4649_p3)
}
 0x667   : > { %s4653_s16 = scalar_lea.hbm %s5952_s17, 2048  ;;  %s4657_s28 = scalar_lea.hbm %s6018_s15, 4096 }
 0x668   : > { %p4654_p4 = scmp.ne.s32.totalorder %s5952_s17, %s4653_s16  ;;  %p4658_p9 = scmp.lt.u32.totalorder %s5952_s17, %s6018_s15 }
 0x669   : > { %p4659_p10 = scmp.lt.u32.totalorder %s4657_s28, %s4653_s16  ;;  %p4661_p12 = scmp.lt.u32.totalorder %s4653_s16, %s5952_s17 }
 0x66a   : > { %p4655_p7 = pnand %p4654_p4, %p4836_p5 }
 0x66b   : > { %p4660_p11 = por %p4659_p10, %p4658_p9 }
 0x66c   : > { %p4656_p8 = pneg %p4655_p7 }
 0x66d   : > { %p4662_p13 = por %p4661_p12, %p4660_p11 }
 0x66f   : > { %p4663_p0 = pnand %p4662_p13, %p4656_p8 }
 0x671   : > { %4666 = shalt.err (!%p4663_p0)
}
 0x672   : > { %s4713_s19 = smov 128   ;;  %s4714_s18 = smov 8  }
 0x673   : > { %4581 = dma.vmem_to_hbm [thread:$0]  (%p4836_p5), %s5954_s27, 2048, %s5952_s17, %s5962_s14, %s4713_s19, %s4713_s19, %s4714_s18  }
 0x674 PF: > { %p4587_p1 = scmp.ge.s32.totalorder %s4701_s23, 2  ;;  %s3474_s1 = sand.u32 1, %s4689_s20  }
 0x675   : > { %s3475_s16 = scalar_lea.sflag [#allocation4], %s3474_s1 }
 0x676   : > { %p4584_p2 = pnand %p4587_p1, %p4840_p6 }
 0x678   : > { %4684 = dma.done.wait (!%p4584_p2), %s3475_s16, 2048  }
 0x679   : > { %4686 = vsyncadd (!%p4584_p2), %s3475_s16, 4294965248  ;;  %s6038_s24 = sld [smem:[#allocation6_spill]]  ;;  %p26_p3 = scmp.ge.s32.totalorder %s4823_s25, 4  }
 0x67a   : > { %s6039_s20 = smov %s4693_s21  ;;  %s6040_s21 = smov %s4697_s22 }
 0x67b   : > { %s6042_s23 = smov %s4823_s25  ;;  %28 = sbr.rel (!%p26_p3) target bundleno = 7 (0x7), region = 118 }
 0x67f   : > { %s6041_s22 = smov %s6038_s24 }
 0x682   :  { %3480 = vsyncpa [#allocation4], 1 }
 0x683   :  { %3482 = vsyncpa [#allocation4 + $0x1], 1 }

</bundles_post_ra>
